<compile_context>
chip_gen: v5e
topology: v5e:2x2
jax: 0.10.0
libtpu: 0.0.40
codegen_flags: <defaults>
</compile_context>

<pallas_src>
import functools

import jax
import jax.numpy as jnp
from jax.experimental import pallas as pl
from jax.experimental.pallas import tpu as pltpu


def _cross_attention_kernel(x_ref, ctx_ref, wq_ref, wkv_ref, wp_ref, bp_ref,
                            cos_ref, sin_neg_ref, sin_pos_ref, o_ref, *,
                            num_heads, compute_dtype):
    _, S, D = x_ref.shape
    _, Sc, _ = ctx_ref.shape
    H = num_heads
    hd = D // H

    x = x_ref[0].astype(compute_dtype)        # (S, D)   current batch element
    ctx = ctx_ref[0].astype(compute_dtype)    # (Sc, D)

    # ---- q projection (softmax scale folded into Wq offline; weights pre-cast) ----
    q_c = jnp.dot(x, wq_ref[...], preferred_element_type=jnp.float32)      # (S, D) f32

    # ---- RoPE: partner swap via static lane rotations (XLU), elementwise in f32 (VPU) ----
    # q_next[j] = q_c[j+1], q_prev[j] = q_c[j-1]; the pre-signed / parity-masked sin
    # tables select the correct partner per lane, so no in-kernel select or iota is needed.
    q_next = pltpu.roll(q_c, D - 1, axis=1)
    q_prev = pltpu.roll(q_c, 1, axis=1)
    q = q_c * cos_ref[...] + q_next * sin_neg_ref[...] + q_prev * sin_pos_ref[...]

    # ---- kv projection ----
    kv = jnp.dot(ctx, wkv_ref[...], preferred_element_type=jnp.float32)    # (Sc, 2D) f32
    k = kv[:, :D]
    v = kv[:, D:]

    # ---- split heads ----
    # TODO(synk): with hd=16 these transposes are not views; at production sizes deliver
    #             head-split tiles via the grid / index_map instead of in-kernel transposes.
    qh = jnp.transpose(q.reshape(S, H, hd), (1, 0, 2)).astype(compute_dtype)    # (H, S, hd)
    kh = jnp.transpose(k.reshape(Sc, H, hd), (1, 0, 2)).astype(compute_dtype)   # (H, Sc, hd)
    vh = jnp.transpose(v.reshape(Sc, H, hd), (1, 0, 2)).astype(compute_dtype)   # (H, Sc, hd)

    # ---- attention; scale already folded into Wq, normalization deferred past PV ----
    s = jnp.einsum('hqd,hkd->hqk', qh, kh, preferred_element_type=jnp.float32)  # (H, S, Sc)
    s = s - jnp.max(s, axis=-1, keepdims=True)
    p = jnp.exp(s)
    denom = jnp.sum(p, axis=-1, keepdims=True)                                  # (H, S, 1)
    pv = jnp.einsum('hqk,hkd->hqd', p.astype(compute_dtype), vh,
                    preferred_element_type=jnp.float32)                         # (H, S, hd)
    pv = pv * pl.reciprocal(denom, approx=True)                                 # EUP slot

    # ---- merge heads once + output projection (+bias) ----
    attn = jnp.transpose(pv, (1, 0, 2)).reshape(S, D)
    out = jnp.dot(attn.astype(compute_dtype), wp_ref[...],
                  preferred_element_type=jnp.float32) + bp_ref[...]
    o_ref[0] = out.astype(o_ref.dtype)


def cross_attention(x, context, wq, wkv, wp, bp, cos_half, sin_half, *,
                    num_heads, compute_dtype=jnp.bfloat16):
    """x: (B,S,D), context: (B,Sc,D), wq/wp: (D,D), wkv: (D,2D) (all stored as [in,out]),
    bp: (1,D), cos_half/sin_half: (S, D//2) RoPE cache (full-model-dim theta, as in the module)."""
    B, S, D = x.shape
    _, Sc, _ = context.shape
    hd = D // num_heads

    # ---- offline parameter prep (constant-folds under jit; zero in-kernel cost) ----
    scale = 1.0 / (hd ** 0.5)
    wq_c = (wq * scale).astype(compute_dtype)     # softmax scale folded into Wq, pre-cast
    wkv_c = wkv.astype(compute_dtype)
    wp_c = wp.astype(compute_dtype)
    bp_f32 = bp.astype(jnp.float32)

    # Full-width RoPE tables (S, D), f32 — shared across the batch grid (not tiled over B).
    # The (-sin, +sin) sign and the even/odd partner selection are folded into two tables.
    cos_full = jnp.repeat(cos_half.astype(jnp.float32), 2, axis=-1)            # (S, D)
    sin_full = jnp.repeat(sin_half.astype(jnp.float32), 2, axis=-1)            # (S, D)
    even = (jnp.arange(D) % 2) == 0
    sin_neg = jnp.where(even, -sin_full, 0.0)     # multiplies q[j+1] on even lanes
    sin_pos = jnp.where(even, 0.0, sin_full)      # multiplies q[j-1] on odd lanes

    itemsize = jnp.dtype(compute_dtype).itemsize
    flops = (2 * B * S * D * D                      # q projection
             + 2 * B * Sc * D * 2 * D               # kv projection
             + 4 * B * num_heads * S * Sc * hd      # scores + PV
             + 2 * B * S * D * D)                   # output projection
    transcendentals = B * num_heads * S * (Sc + 1)  # exp + reciprocal
    bytes_accessed = (4 * (2 * B * S * D + B * Sc * D + 3 * S * D + D)
                      + itemsize * (D * D + D * 2 * D + D * D))

    kernel = functools.partial(_cross_attention_kernel,
                               num_heads=num_heads, compute_dtype=compute_dtype)
    vmem_whole = pl.BlockSpec(memory_space=pltpu.MemorySpace.VMEM)   # resident, not re-DMAed

    out = pl.pallas_call(
        kernel,
        out_shape=jax.ShapeDtypeStruct((B, S, D), x.dtype),
        grid=(B,),
        in_specs=[
            pl.BlockSpec((1, S, D), lambda b: (b, 0, 0)),     # x (pipelined per batch)
            pl.BlockSpec((1, Sc, D), lambda b: (b, 0, 0)),    # context (pipelined per batch)
            vmem_whole,                                       # wq (scaled, pre-cast)
            vmem_whole,                                       # wkv (pre-cast)
            vmem_whole,                                       # wp (pre-cast)
            vmem_whole,                                       # bp (f32)
            vmem_whole,                                       # cos table (S, D)
            vmem_whole,                                       # sin_neg table (S, D)
            vmem_whole,                                       # sin_pos table (S, D)
        ],
        out_specs=pl.BlockSpec((1, S, D), lambda b: (b, 0, 0)),
        compiler_params=pltpu.CompilerParams(
            dimension_semantics=("parallel",),               # megacore split on v7x
            vmem_limit_bytes=32 * 1024 * 1024),
        cost_estimate=pl.CostEstimate(flops=flops,
                                      transcendentals=transcendentals,
                                      bytes_accessed=bytes_accessed),
    )(x, context, wq_c, wkv_c, wp_c, bp_f32, cos_full, sin_neg, sin_pos)
    return out


def reference_cross_attention(x, context, wq, wkv, wp, bp, cos_half, sin_half, num_heads):
    """Plain-JAX reference replicating the PyTorch eval-mode forward."""
    B, S, D = x.shape
    _, Sc, _ = context.shape
    hd = D // num_heads
    q = x @ wq                                   # (B,S,D)
    kv = context @ wkv                           # (B,Sc,2D)
    k, v = kv[..., :D], kv[..., D:]

    # RoPE on q: full-model-dim cache, pairwise interleaved (element j uses freq j//2),
    # equivalent to the module's head-split application of the full-dim cache.
    qp = q.reshape(B, S, D // 2, 2)
    cos = cos_half[None]
    sin = sin_half[None]
    r_even = qp[..., 0] * cos - qp[..., 1] * sin
    r_odd = qp[..., 1] * cos + qp[..., 0] * sin
    q = jnp.stack([r_even, r_odd], axis=-1).reshape(B, S, D)

    qh = q.reshape(B, S, num_heads, hd).transpose(0, 2, 1, 3)
    kh = k.reshape(B, Sc, num_heads, hd).transpose(0, 2, 1, 3)
    vh = v.reshape(B, Sc, num_heads, hd).transpose(0, 2, 1, 3)
    scores = jnp.einsum('bhsd,bhtd->bhst', qh, kh) / jnp.sqrt(jnp.float32(hd))
    p = jax.nn.softmax(scores, axis=-1)
    o = jnp.einsum('bhst,bhtd->bhsd', p, vh)
    o = o.transpose(0, 2, 1, 3).reshape(B, S, D)
    return o @ wp + bp


if __name__ == "__main__":
    # Small shapes consistent with the module defaults: num_heads=8, max_seq_len=16.
    # D=128 keeps every kernel block lane-dense (multiple of 128).
    B, S, S_ctx = 2, 8, 12
    D, H = 128, 8
    max_seq_len = 16
    base = 10000.0

    key = jax.random.PRNGKey(0)
    kx, kc, k1, k2, k3, k4 = jax.random.split(key, 6)
    x = jax.random.normal(kx, (B, S, D), dtype=jnp.float32)
    context = jax.random.normal(kc, (B, S_ctx, D), dtype=jnp.float32)

    # Deterministic parameter init (qkv_bias=False; proj has bias); weights stored as [in, out].
    wq = 0.05 * jax.random.normal(k1, (D, D), dtype=jnp.float32)
    wkv = 0.05 * jax.random.normal(k2, (D, 2 * D), dtype=jnp.float32)
    wp = 0.05 * jax.random.normal(k3, (D, D), dtype=jnp.float32)
    bp = 0.05 * jax.random.normal(k4, (1, D), dtype=jnp.float32)

    # RoPE cache built with the FULL model dim (as in the PyTorch RotaryPosEmbed module).
    theta = 1.0 / (base ** (jnp.arange(0, D, 2, dtype=jnp.float32) / D))   # (D//2,)
    seq_idx = jnp.arange(max_seq_len, dtype=jnp.float32)
    idx_theta = jnp.einsum('i,j->ij', seq_idx, theta)                      # (max_seq_len, D//2)
    cos_half = jnp.cos(idx_theta)[:S]                                      # (S, D//2)
    sin_half = jnp.sin(idx_theta)[:S]

    ref = reference_cross_attention(x, context, wq, wkv, wp, bp, cos_half, sin_half, H)

    # bf16 matmul-operand path (default; v6e/v7x MXU-native). f32 accumulation and softmax.
    out_bf16 = cross_attention(x, context, wq, wkv, wp, bp, cos_half, sin_half, num_heads=H)
    out_bf16 = jax.block_until_ready(out_bf16)
    assert out_bf16.shape == (B, S, D)
    assert jnp.allclose(out_bf16, ref, atol=3e-2, rtol=3e-2), "bf16 kernel mismatch vs reference"

    # f32 verification path — tolerance loosened slightly because the softmax denominator
    # uses the EUP approximate reciprocal.
    out_f32 = cross_attention(x, context, wq, wkv, wp, bp, cos_half, sin_half,
                              num_heads=H, compute_dtype=jnp.float32)
    out_f32 = jax.block_until_ready(out_f32)
    assert jnp.allclose(out_f32, ref, atol=3e-3, rtol=3e-3), "f32 kernel mismatch vs reference"

    print("KERNEL_OK")
</pallas_src>

<mosaic_0001>
module attributes {stable_mosaic.version = 11 : i64} {
  func.func @_cross_attention_kernel(%arg0: i32, %arg1: memref<1x8x128xf32, #tpu.memory_space<vmem>>, %arg2: memref<1x12x128xf32, #tpu.memory_space<vmem>>, %arg3: memref<128x128xbf16, #tpu.memory_space<vmem>>, %arg4: memref<128x256xbf16, #tpu.memory_space<vmem>>, %arg5: memref<128x128xbf16, #tpu.memory_space<vmem>>, %arg6: memref<1x128xf32, #tpu.memory_space<vmem>>, %arg7: memref<8x128xf32, #tpu.memory_space<vmem>>, %arg8: memref<8x128xf32, #tpu.memory_space<vmem>>, %arg9: memref<8x128xf32, #tpu.memory_space<vmem>>, %arg10: memref<1x8x128xf32, #tpu.memory_space<vmem>>) attributes {dimension_semantics = [#tpu.dimension_semantics<parallel>], iteration_bounds = array<i64: 2>, scalar_prefetch = 0 : i64, scratch_operands = 0 : i64, tpu.core_type = #tpu.core_type<tc>, window_params = [{transform_indices = @transform_0, window_bounds = array<i64: 1, 8, 128>}, {transform_indices = @transform_1, window_bounds = array<i64: 1, 12, 128>}, {pipeline_mode = #tpu.pipeline_mode<synchronous>, transform_indices = @transform_2, window_bounds = array<i64: 128, 128>}, {pipeline_mode = #tpu.pipeline_mode<synchronous>, transform_indices = @transform_3, window_bounds = array<i64: 128, 256>}, {pipeline_mode = #tpu.pipeline_mode<synchronous>, transform_indices = @transform_4, window_bounds = array<i64: 128, 128>}, {pipeline_mode = #tpu.pipeline_mode<synchronous>, transform_indices = @transform_5, window_bounds = array<i64: 1, 128>}, {pipeline_mode = #tpu.pipeline_mode<synchronous>, transform_indices = @transform_6, window_bounds = array<i64: 8, 128>}, {pipeline_mode = #tpu.pipeline_mode<synchronous>, transform_indices = @transform_7, window_bounds = array<i64: 8, 128>}, {pipeline_mode = #tpu.pipeline_mode<synchronous>, transform_indices = @transform_8, window_bounds = array<i64: 8, 128>}, {transform_indices = @transform_9, window_bounds = array<i64: 1, 8, 128>}]} {
    %c0 = arith.constant 0 : index
    %c0_0 = arith.constant 0 : index
    %c0_1 = arith.constant 0 : index
    %0 = vector.load %arg1[%c0, %c0_0, %c0_1] : memref<1x8x128xf32, #tpu.memory_space<vmem>>, vector<1x8x128xf32>
    %1 = vector.shape_cast %0 : vector<1x8x128xf32> to vector<8x128xf32>
    %2 = arith.truncf %1 : vector<8x128xf32> to vector<8x128xbf16>
    %c0_2 = arith.constant 0 : index
    %c0_3 = arith.constant 0 : index
    %c0_4 = arith.constant 0 : index
    %3 = vector.load %arg2[%c0_2, %c0_3, %c0_4] : memref<1x12x128xf32, #tpu.memory_space<vmem>>, vector<1x12x128xf32>
    %4 = vector.shape_cast %3 : vector<1x12x128xf32> to vector<12x128xf32>
    %5 = arith.truncf %4 : vector<12x128xf32> to vector<12x128xbf16>
    %c0_5 = arith.constant 0 : index
    %c0_6 = arith.constant 0 : index
    %6 = vector.load %arg3[%c0_5, %c0_6] : memref<128x128xbf16, #tpu.memory_space<vmem>>, vector<128x128xbf16>
    %cst = arith.constant dense<0.000000e+00> : vector<8x128xf32>
    %7 = tpu.matmul %2, %6, %cst {dimension_numbers = #tpu.dot_dimension_numbers<[1], [0], [0], [1], [0, 0, 1, 1], [], []>} : vector<8x128xbf16>, vector<128x128xbf16>, vector<8x128xf32> -> vector<8x128xf32>
    %c127_i32 = arith.constant 127 : i32
    %8 = tpu.dynamic_rotate %7 by %c127_i32 dim 1 : vector<8x128xf32>, i32 -> vector<8x128xf32>
    %c1_i32 = arith.constant 1 : i32
    %9 = tpu.dynamic_rotate %7 by %c1_i32 dim 1 : vector<8x128xf32>, i32 -> vector<8x128xf32>
    %c0_7 = arith.constant 0 : index
    %c0_8 = arith.constant 0 : index
    %10 = vector.load %arg7[%c0_7, %c0_8] : memref<8x128xf32, #tpu.memory_space<vmem>>, vector<8x128xf32>
    %11 = arith.mulf %7, %10 : vector<8x128xf32>
    %c0_9 = arith.constant 0 : index
    %c0_10 = arith.constant 0 : index
    %12 = vector.load %arg8[%c0_9, %c0_10] : memref<8x128xf32, #tpu.memory_space<vmem>>, vector<8x128xf32>
    %13 = arith.mulf %8, %12 : vector<8x128xf32>
    %14 = arith.addf %11, %13 : vector<8x128xf32>
    %c0_11 = arith.constant 0 : index
    %c0_12 = arith.constant 0 : index
    %15 = vector.load %arg9[%c0_11, %c0_12] : memref<8x128xf32, #tpu.memory_space<vmem>>, vector<8x128xf32>
    %16 = arith.mulf %9, %15 : vector<8x128xf32>
    %17 = arith.addf %14, %16 : vector<8x128xf32>
    %c0_13 = arith.constant 0 : index
    %c0_14 = arith.constant 0 : index
    %18 = vector.load %arg4[%c0_13, %c0_14] : memref<128x256xbf16, #tpu.memory_space<vmem>>, vector<128x256xbf16>
    %cst_15 = arith.constant dense<0.000000e+00> : vector<12x256xf32>
    %19 = tpu.matmul %5, %18, %cst_15 {dimension_numbers = #tpu.dot_dimension_numbers<[1], [0], [0], [1], [0, 0, 1, 1], [], []>} : vector<12x128xbf16>, vector<128x256xbf16>, vector<12x256xf32> -> vector<12x256xf32>
    %20 = vector.extract_strided_slice %19 {offsets = [0, 0], sizes = [12, 128], strides = [1, 1]} : vector<12x256xf32> to vector<12x128xf32>
    %21 = vector.extract_strided_slice %19 {offsets = [0, 128], sizes = [12, 128], strides = [1, 1]} : vector<12x256xf32> to vector<12x128xf32>
    %22 = vector.shape_cast %17 : vector<8x128xf32> to vector<8x8x16xf32>
    %23 = tpu.transpose %22, [1, 0, 2] : vector<8x8x16xf32> -> vector<8x8x16xf32>
    %24 = arith.truncf %23 : vector<8x8x16xf32> to vector<8x8x16xbf16>
    %25 = vector.shape_cast %20 : vector<12x128xf32> to vector<12x8x16xf32>
    %26 = tpu.transpose %25, [1, 0, 2] : vector<12x8x16xf32> -> vector<8x12x16xf32>
    %27 = arith.truncf %26 : vector<8x12x16xf32> to vector<8x12x16xbf16>
    %28 = vector.shape_cast %21 : vector<12x128xf32> to vector<12x8x16xf32>
    %29 = tpu.transpose %28, [1, 0, 2] : vector<12x8x16xf32> -> vector<8x12x16xf32>
    %30 = arith.truncf %29 : vector<8x12x16xf32> to vector<8x12x16xbf16>
    "tpu.trace_start"() <{level = 10 : i32, message = "hqd,hkd->hqk"}> : () -> ()
    %cst_16 = arith.constant dense<0.000000e+00> : vector<8x8x12xf32>
    %31 = tpu.matmul %24, %27, %cst_16 {dimension_numbers = #tpu.dot_dimension_numbers<[2], [2], [1], [1], [0, 0, 0, 1, 1, 1], [0], [0]>} : vector<8x8x16xbf16>, vector<8x12x16xbf16>, vector<8x8x12xf32> -> vector<8x8x12xf32>
    "tpu.trace_stop"() : () -> ()
    %cst_17 = arith.constant dense<0xFF800000> : vector<8x8xf32>
    %32 = vector.multi_reduction <maximumf>, %31, %cst_17 [2] : vector<8x8x12xf32> to vector<8x8xf32>
    %33 = vector.shape_cast %32 : vector<8x8xf32> to vector<8x8x1xf32>
    %34 = vector.broadcast %33 : vector<8x8x1xf32> to vector<8x8x12xf32>
    %35 = arith.subf %31, %34 : vector<8x8x12xf32>
    %36 = math.exp %35 : vector<8x8x12xf32>
    %cst_18 = arith.constant dense<0.000000e+00> : vector<8x8xf32>
    %37 = vector.multi_reduction <add>, %36, %cst_18 [2] : vector<8x8x12xf32> to vector<8x8xf32>
    %38 = vector.shape_cast %37 : vector<8x8xf32> to vector<8x8x1xf32>
    %39 = arith.truncf %36 : vector<8x8x12xf32> to vector<8x8x12xbf16>
    "tpu.trace_start"() <{level = 10 : i32, message = "hqk,hkd->hqd"}> : () -> ()
    %cst_19 = arith.constant dense<0.000000e+00> : vector<8x8x16xf32>
    %40 = tpu.matmul %39, %30, %cst_19 {dimension_numbers = #tpu.dot_dimension_numbers<[2], [1], [1], [2], [0, 0, 0, 1, 1, 2], [0], [0]>} : vector<8x8x12xbf16>, vector<8x12x16xbf16>, vector<8x8x16xf32> -> vector<8x8x16xf32>
    "tpu.trace_stop"() : () -> ()
    %41 = tpu.reciprocal %38 {approx = true} : vector<8x8x1xf32> -> vector<8x8x1xf32>
    %42 = vector.broadcast %41 : vector<8x8x1xf32> to vector<8x8x16xf32>
    %43 = arith.mulf %40, %42 : vector<8x8x16xf32>
    %44 = tpu.transpose %43, [1, 0, 2] : vector<8x8x16xf32> -> vector<8x8x16xf32>
    %45 = vector.shape_cast %44 : vector<8x8x16xf32> to vector<8x128xf32>
    %46 = arith.truncf %45 : vector<8x128xf32> to vector<8x128xbf16>
    %c0_20 = arith.constant 0 : index
    %c0_21 = arith.constant 0 : index
    %47 = vector.load %arg5[%c0_20, %c0_21] : memref<128x128xbf16, #tpu.memory_space<vmem>>, vector<128x128xbf16>
    %cst_22 = arith.constant dense<0.000000e+00> : vector<8x128xf32>
    %48 = tpu.matmul %46, %47, %cst_22 {dimension_numbers = #tpu.dot_dimension_numbers<[1], [0], [0], [1], [0, 0, 1, 1], [], []>} : vector<8x128xbf16>, vector<128x128xbf16>, vector<8x128xf32> -> vector<8x128xf32>
    %c0_23 = arith.constant 0 : index
    %c0_24 = arith.constant 0 : index
    %49 = vector.load %arg6[%c0_23, %c0_24] : memref<1x128xf32, #tpu.memory_space<vmem>>, vector<1x128xf32>
    %50 = vector.broadcast %49 : vector<1x128xf32> to vector<8x128xf32>
    %51 = arith.addf %48, %50 : vector<8x128xf32>
    %c0_25 = arith.constant 0 : index
    %c0_26 = arith.constant 0 : index
    %c0_27 = arith.constant 0 : index
    %52 = vector.load %arg10[%c0_25, %c0_26, %c0_27] : memref<1x8x128xf32, #tpu.memory_space<vmem>>, vector<1x8x128xf32>
    %53 = vector.shape_cast %52 : vector<1x8x128xf32> to vector<8x128xf32>
    %54 = vector.shape_cast %51 : vector<8x128xf32> to vector<1x8x128xf32>
    tpu.vector_store %arg10[%c0_25, %c0_26, %c0_27], %54 {strides = array<i32>} : memref<1x8x128xf32, #tpu.memory_space<vmem>>, vector<1x8x128xf32>,
    return
  }
  func.func @transform_0(%arg0: i32) -> (i32, i32, i32) {
    %c0_i32 = arith.constant 0 : i32
    %c0_i32_0 = arith.constant 0 : i32
    %c0_i32_1 = arith.constant 0 : i32
    return %arg0, %c0_i32, %c0_i32_0 : i32, i32, i32
  }
  func.func @transform_1(%arg0: i32) -> (i32, i32, i32) {
    %c0_i32 = arith.constant 0 : i32
    %c0_i32_0 = arith.constant 0 : i32
    %c0_i32_1 = arith.constant 0 : i32
    return %arg0, %c0_i32, %c0_i32_0 : i32, i32, i32
  }
  func.func @transform_2(%arg0: i32) -> (i32, i32) {
    %c0_i32 = arith.constant 0 : i32
    %c0_i32_0 = arith.constant 0 : i32
    %c0_i32_1 = arith.constant 0 : i32
    return %c0_i32, %c0_i32_0 : i32, i32
  }
  func.func @transform_3(%arg0: i32) -> (i32, i32) {
    %c0_i32 = arith.constant 0 : i32
    %c0_i32_0 = arith.constant 0 : i32
    %c0_i32_1 = arith.constant 0 : i32
    return %c0_i32, %c0_i32_0 : i32, i32
  }
  func.func @transform_4(%arg0: i32) -> (i32, i32) {
    %c0_i32 = arith.constant 0 : i32
    %c0_i32_0 = arith.constant 0 : i32
    %c0_i32_1 = arith.constant 0 : i32
    return %c0_i32, %c0_i32_0 : i32, i32
  }
  func.func @transform_5(%arg0: i32) -> (i32, i32) {
    %c0_i32 = arith.constant 0 : i32
    %c0_i32_0 = arith.constant 0 : i32
    %c0_i32_1 = arith.constant 0 : i32
    return %c0_i32, %c0_i32_0 : i32, i32
  }
  func.func @transform_6(%arg0: i32) -> (i32, i32) {
    %c0_i32 = arith.constant 0 : i32
    %c0_i32_0 = arith.constant 0 : i32
    %c0_i32_1 = arith.constant 0 : i32
    return %c0_i32, %c0_i32_0 : i32, i32
  }
  func.func @transform_7(%arg0: i32) -> (i32, i32) {
    %c0_i32 = arith.constant 0 : i32
    %c0_i32_0 = arith.constant 0 : i32
    %c0_i32_1 = arith.constant 0 : i32
    return %c0_i32, %c0_i32_0 : i32, i32
  }
  func.func @transform_8(%arg0: i32) -> (i32, i32) {
    %c0_i32 = arith.constant 0 : i32
    %c0_i32_0 = arith.constant 0 : i32
    %c0_i32_1 = arith.constant 0 : i32
    return %c0_i32, %c0_i32_0 : i32, i32
  }
  func.func @transform_9(%arg0: i32) -> (i32, i32, i32) {
    %c0_i32 = arith.constant 0 : i32
    %c0_i32_0 = arith.constant 0 : i32
    %c0_i32_1 = arith.constant 0 : i32
    return %arg0, %c0_i32, %c0_i32_0 : i32, i32, i32
  }
}

</mosaic_0001>

<bundles_post_ra>
// kernel: tpu_custom_call.1
= control target key start
LH: loop header
LB: loop body
LE: loop exit
PB: predicated region body
PF: predicated region fallthrough
CT: control target
= control target key end

     0   :  { %s3972_s0 = inlined_call_operand.vmem [shape: f32[2,8,128], index: 0, kind: input, shape index: {}]   ;;  %s3973_s1 = inlined_call_operand.vmem [shape: f32[2,12,128], index: 1, kind: input, shape index: {}]   ;;  %s3974_s2 = inlined_call_operand.hbm [shape: bf16[128,128], index: 2, kind: input, shape index: {}]   ;;  %s3975_s3 = inlined_call_operand.hbm [shape: bf16[128,256], index: 3, kind: input, shape index: {}]   ;;  %s3976_s4 = inlined_call_operand.hbm [shape: bf16[128,128], index: 4, kind: input, shape index: {}]   ;;  %s3977_s5 = inlined_call_operand.vmem [shape: f32[1,128], index: 5, kind: input, shape index: {}]   ;;  %s3978_s6 = inlined_call_operand.vmem [shape: f32[8,128], index: 6, kind: input, shape index: {}]   ;;  %s3979_s7 = inlined_call_operand.vmem [shape: f32[8,128], index: 7, kind: input, shape index: {}]   ;;  %s3980_s8 = inlined_call_operand.vmem [shape: f32[8,128], index: 8, kind: input, shape index: {}]   ;;  %s3981_s9 = inlined_call_operand.hbm [shape: f32[2,8,128], index: 9, kind: output, shape index: {}]  }
   0x1   :  { %3983 = sst [smem:[#allocation14_spill]] %s3974_s2 }
   0x2   :  { %3984 = sst [smem:[#allocation15_spill]] %s3975_s3 }
   0x3   :  { %14 = vsyncpa [#allocation3], 0 }
   0x4   :  { %15 = vsyncpa [#allocation6], 0 }
   0x5   :  { %16 = vsyncpa [#allocation4], 0 }
   0x6   :  { %18 = vsyncpa [#allocation4 + $0x1], 0  ;;  %s3221_s30 = smov 0   ;;  %s3223_s10 = smov 0  }
   0x7   :  { %s3225_s11 = smov 0   ;;  %s3227_s12 = smov 0  }
   0x8 LB: > { %3985 = sst [smem:[#allocation12_spill]] %s3147_s11  ;;  %s3242_s13 = sadd.s32 4294967295, %s3151_s12   ;;  %s3151_s12 = sphi %s3227_s12, %s3997_s12   ;;  %s3147_s11 = sphi %s3225_s11, %s3994_s11   ;;  %s3143_s10 = sphi %s3223_s10, %s3996_s10   ;;  %s3139_s30 = sphi %s3221_s30, %s3995_s30  }
   0x9   : > { %s2613_s14 = sadd.s32 4294967294, %s3151_s12   ;;  %s3246_s15 = sadd.s32 1, %s3151_s12  }
   0xa   : > { %s230_s16 = sadd.s32 1, %s3147_s11  ;;  %s227_s17 = ssub.s32 %s3151_s12, %s3246_s15 }
   0xb   : > { %p240_p0 = scmp.ne.s32.totalorder %s3147_s11, %s3143_s10  ;;  %p228_p1 = scmp.eq.s32.totalorder %s227_s17, 0 }
   0xc   : > { %p241_p2 = scmp.eq.s32.totalorder %s3242_s13, 1  ;;  %p246_p3 = scmp.ne.s32.totalorder %s3143_s10, %s3139_s30 }
   0xd   : > { %p247_p4 = scmp.eq.s32.totalorder %s2613_s14, 1  ;;  %p2614_p7 = scmp.ge.s32.totalorder %s3151_s12, 1 }
   0xe   : > { %s3257_s18 = scalar_select %p228_p1, %s3147_s11, %s230_s16  }
   0xf   : > { %p3259_p5 = por %p241_p2, %p240_p0  ;;  %p3263_p6 = por %p247_p4, %p246_p3 }
  0x10   : > { %3986 = sst [smem:[#allocation13_spill]] %s3257_s18  ;;  %p254_p8 = scmp.lt.s32.totalorder %s3151_s12, 3 }
  0x11   : > { %p2836_p9 = scmp.eq.s32.totalorder %s3242_s13, 0  ;;  %s3990_s3 = sld [smem:[#allocation15_spill]] }
  0x12   : > { %p3270_p10 = pnand %p2614_p7, %p254_p8  ;;  %s3153_s25 = smov [#allocation5]  }
  0x13   : > { %s281_s26 = sshll.u32 %s3153_s25, 4  ;;  %s3992_s2 = sld [smem:[#allocation14_spill]]  ;;  %s282_s26 = int_to_ptr.vmem [resolvable:$true] %s281_s26 }
  0x14   : > { %p2822_p11 = pneg %p3270_p10  ;;  %s3154_s16 = smov 128  }
  0x15   : > { %s3155_s17 = smov 8   ;;  %s3156_s22 = smov [#allocation2]  }
  0x16   : > { %p3281_p12 = pnand %p2836_p9, %p2822_p11  ;;  %s267_s23 = sshll.u32 %s3156_s22, 4  ;;  %s268_s23 = int_to_ptr.vmem [resolvable:$true] %s267_s23 }
  0x17   : > { %s279_s24 = sshll.u32 %s3990_s3, 4  ;;  %s3157_s25 = smov 64   ;;  %s280_s24 = int_to_ptr.hbm [resolvable:$true] %s279_s24 }
  0x18   : > { %2828 = dma.hbm_to_vmem [thread:$0]  (!%p3281_p12), %s280_s24, 2048, %s282_s26, [#allocation6], %s3154_s16, %s3154_s16, %s3155_s17  }
  0x19   : > { %s265_s14 = sshll.u32 %s3992_s2, 4  ;;  %s3158_s3 = smov 4   ;;  %s266_s14 = int_to_ptr.hbm [resolvable:$true] %s265_s14 }
  0x1a   : > { %2825 = dma.hbm_to_vmem [thread:$0]  (!%p3281_p12), %s266_s14, 1024, %s268_s23, [#allocation3], %s3157_s25, %s3157_s25, %s3158_s3  }
  0x1b   : > { %s293_s28 = sshll.u32 %s3976_s4, 4  ;;  %s3159_s29 = smov [#allocation7]   ;;  %s294_s28 = int_to_ptr.hbm [resolvable:$true] %s293_s28 }
  0x1c   : > { %s295_s2 = sshll.u32 %s3159_s29, 4  ;;  %338 = sbr.rel (%p3270_p10) target bundleno = 1217 (0x4c1), region = 56  ;;  %s296_s2 = int_to_ptr.vmem [resolvable:$true] %s295_s2 }
  0x1d   : > { %2831 = dma.hbm_to_vmem [thread:$0]  (!%p3281_p12), %s294_s28, 1024, %s296_s2, [#allocation6], %s3157_s25, %s3157_s25, %s3158_s3  }
  0x21   : > { %3126 = dma.done.wait (%p2836_p9), [#allocation3], 1024  }
  0x22   : > { %3128 = vsyncadd (%p2836_p9), [#allocation3], 4294966272 }
  0x23   : > { %3130 = dma.done.wait (%p2836_p9), [#allocation6], 3072  }
  0x24   : > { %3132 = vsyncadd (%p2836_p9), [#allocation6], 4294964224  ;;  %v2783_v0 = vld [vmem:[#allocation2 + $0x38] sm:$0xff]  ;;  %v2717_v1 = vld [vmem:[#allocation5 + $0x70] sm:$0xf]  ;;  %p389_p13 = scmp.lt.s32.totalorder %s3242_s13, 1 }
  0x25   : > { %v2799_v2 = vld [vmem:[#allocation5 + $0x74] sm:$0xf0]  ;;  %v2709_v4 = vld [vmem:[#allocation5 + $0x60] sm:$0xf]  ;;  %v2797_v5 = vld [vmem:[#allocation5 + $0x64] sm:$0xf0]  ;;  %468 = vmatpush.bf16.msra.mxu0 %v2783_v0 }
  0x26   : > { %v2718_v3 = vor.u32 %v2799_v2, %v2717_v1  ;;  %v2782_v6 = vld [vmem:[#allocation2 + $0x30] sm:$0xff]  ;;  %v2710_v7 = vor.u32 %v2797_v5, %v2709_v4  ;;  %v2795_v9 = vld [vmem:[#allocation5 + $0x54] sm:$0xf0]  ;;  %v2781_v10 = vld [vmem:[#allocation2 + $0x28] sm:$0xff]  ;;  %s390_s2 = scalar_select %p389_p13, %s3242_s13, 1  ;;  %vm640_vm0 = vcmask 1047556  }
  0x27   : > { %v2701_v8 = vld [vmem:[#allocation5 + $0x50] sm:$0xf]  ;;  %v2693_v12 = vld [vmem:[#allocation5 + $0x40] sm:$0xf]  ;;  %v2793_v13 = vld [vmem:[#allocation5 + $0x44] sm:$0xf0] }
  0x28   : > { %589 = vmatpush.bf16.msra.mxu1 %v2718_v3  ;;  %v2702_v11 = vor.u32 %v2795_v9, %v2701_v8  ;;  %v2780_v14 = vld [vmem:[#allocation2 + $0x20] sm:$0xff]  ;;  %v2694_v15 = vor.u32 %v2793_v13, %v2693_v12  ;;  %v2685_v16 = vld [vmem:[#allocation5 + $0x30] sm:$0xf]  ;;  %v2791_v17 = vld [vmem:[#allocation5 + $0x34] sm:$0xf0]  ;;  %s2624_s3 = sshll.u32 %s390_s2, 3 }
  0x29   : > { %469 = vmatpush.bf16.msra.mxu0 %v2782_v6  ;;  %v2779_v18 = vld [vmem:[#allocation2 + $0x18] sm:$0xff]  ;;  %v2686_v19 = vor.u32 %v2791_v17, %v2685_v16  ;;  %v2677_v20 = vld [vmem:[#allocation5 + $0x20] sm:$0xf]  ;;  %v2789_v21 = vld [vmem:[#allocation5 + $0x24] sm:$0xf0]  ;;  %s2775_s11 = sshll.u32 %s390_s2, 4  ;;  %s392_s24 = scalar_lea.vmem %s3972_s0, %s2624_s3 }
  0x2a   : > { %v2778_v22 = vld [vmem:[#allocation2 + $0x10] sm:$0xff]  ;;  %v2678_v23 = vor.u32 %v2789_v21, %v2677_v20  ;;  %v2787_v25 = vld [vmem:[#allocation5 + $0x14] sm:$0xf0]  ;;  %v2777_v26 = vld [vmem:[#allocation2 + $0x8] sm:$0xff]  ;;  %s397_s14 = scalar_lea.vmem %s3973_s1, %s2775_s11  ;;  %s3160_s16 = smov 127   ;;  %vm1669_vm1 = vcmask 130048  }
  0x2b   : > { %v2669_v24 = vld [vmem:[#allocation5 + $0x10] sm:$0xf]  ;;  %v2661_v28 = vld [vmem:[#allocation5] sm:$0xf]  ;;  %v2785_v29 = vld [vmem:[#allocation5 + $0x4] sm:$0xf0] }
  0x2c   : > { %590 = vmatpush.bf16.msra.mxu1 %v2710_v7  ;;  %v2670_v27 = vor.u32 %v2787_v25, %v2669_v24  ;;  %v2776_v30 = vld [vmem:[#allocation2] sm:$0xff]  ;;  %v2662_v32 = vor.u32 %v2785_v29, %v2661_v28  ;;  %v402_v34 = vld [vmem:[%s397_s14 + $0x8] sm:$0xf]  ;;  %v2798_v37 = vld [vmem:[#allocation5 + $0x74] sm:$0xf]  ;;  %s3161_s17 = smov 1  }
  0x2d   : > { %470 = vmatpush.bf16.msra.mxu0 %v2781_v10  ;;  %v399_v31 = vld [vmem:[%s392_s24] sm:$0xff]  ;;  %v2719_v38 = vld [vmem:[#allocation5 + $0x78] sm:$0xf0]  ;;  %v2711_v41 = vld [vmem:[#allocation5 + $0x68] sm:$0xf0]  ;;  %s3162_s22 = smov 112  }
  0x2e   : > { %v401_v33 = vld [vmem:[%s397_s14] sm:$0xff]  ;;  %v400_v35 = vpack.c.bf16 %v399_v31, %v399_v31  ;;  %v2722_v40 = vor.u32 %v2798_v37, %v2719_v38  ;;  %v2794_v45 = vld [vmem:[#allocation5 + $0x54] sm:$0xf]  ;;  %v2703_v46 = vld [vmem:[#allocation5 + $0x58] sm:$0xf0]  ;;  %s3163_s23 = smov 64  }
  0x2f   : > { %v403_v36 = vpack.c.bf16 %v402_v34, %v401_v33  ;;  %v2796_v39 = vld [vmem:[#allocation5 + $0x64] sm:$0xf]  ;;  %v2706_v47 = vor.u32 %v2794_v45, %v2703_v46  ;;  %v2695_v49 = vld [vmem:[#allocation5 + $0x48] sm:$0xf0]  ;;  %v2790_v53 = vld [vmem:[#allocation5 + $0x34] sm:$0xf] }
  0x30   : > { %591 = vmatpush.bf16.msra.mxu1 %v2702_v11  ;;  %603 = vmatpush.bf16.msra.mxu2 %v2722_v40  ;;  %v2714_v43 = vor.u32 %v2796_v39, %v2711_v41  ;;  %v2792_v48 = vld [vmem:[#allocation5 + $0x44] sm:$0xf]  ;;  %v2687_v54 = vld [vmem:[#allocation5 + $0x38] sm:$0xf0]  ;;  %v2679_v58 = vld [vmem:[#allocation5 + $0x28] sm:$0xf0] }
  0x31   : > { %471 = vmatpush.bf16.msra.mxu0 %v2780_v14  ;;  %v2698_v51 = vor.u32 %v2792_v48, %v2695_v49  ;;  %v2690_v56 = vor.u32 %v2790_v53, %v2687_v54  ;;  %v2788_v57 = vld [vmem:[#allocation5 + $0x24] sm:$0xf]  ;;  %s3164_s25 = smov 48   ;;  %v2786_v60 = vld [vmem:[#allocation5 + $0x14] sm:$0xf]  ;;  %s3165_s28 = smov 96  }
  0x32   : > { %v2682_v59 = vor.u32 %v2788_v57, %v2679_v58  ;;  %v2671_v61 = vld [vmem:[#allocation5 + $0x18] sm:$0xf0]  ;;  %s3166_s29 = smov 80   ;;  %v2784_v63 = vld [vmem:[#allocation5 + $0x4] sm:$0xf]  ;;  %s3167_s2 = smov 32  }
  0x33   : > { %v2674_v62 = vor.u32 %v2786_v60, %v2671_v61  ;;  %v2663_v0 = vld [vmem:[#allocation5 + $0x8] sm:$0xf0]  ;;  %s3168_s3 = smov 16   ;;  %v487_v4 = vld [vmem:[%s3979_s7] sm:$0xff]  ;;  %v3169_v17 = vmov 1983009808  }
  0x34   : > { %592 = vmatpush.bf16.msra.mxu1 %v2694_v15  ;;  %604 = vmatpush.bf16.msra.mxu2 %v2714_v43  ;;  %v2666_v1 = vor.u32 %v2784_v63, %v2663_v0  ;;  %v485_v6 = vld [vmem:[%s3978_s6] sm:$0xff]  ;;  %vm1946_vm2 = vcmask 1045504   ;;  %vm1857_vm3 = vcmask 97280   ;;  %vm2400_vm4 = vcmask 261120   ;;  %s386_s14 = sand.u32 1, %s3143_s10   ;;  %s3101_s27 = scalar_lea.hbm %s3981_s9, 16 }
  0x35   : > { %472 = vmatpush.bf16.msra.mxu0 %v2779_v18  ;;  %v490_v8 = vld [vmem:[%s3980_s8] sm:$0xff]  ;;  %v645_v18 = vunpack.c.l.s4 %v3169_v17  ;;  %vm2402_vm5 = vcmask 392192   ;;  %vm2404_vm6 = vcmask 523264   ;;  %vm2406_vm7 = vcmask 654336   ;;  %s2496_s18 = scalar_lea.sflag [#allocation4], %s386_s14 }
  0x36   : > { %vm2408_vm8 = vcmask 785408   ;;  %vm2410_vm9 = vcmask 916480  }
  0x37   : > { %v3347_v25 = vunpack.c.0.s8 %v645_v18 }
  0x38   : > { %593 = vmatpush.bf16.msra.mxu1 %v2686_v19  ;;  %605 = vmatpush.bf16.msra.mxu2 %v2706_v47 }
  0x39   : > { %473 = vmatpush.bf16.msra.mxu0 %v2778_v22 }
  0x3c   : > { %594 = vmatpush.bf16.msra.mxu1 %v2678_v23  ;;  %606 = vmatpush.bf16.msra.mxu2 %v2698_v51 }
  0x3d   : > { %474 = vmatpush.bf16.msra.mxu0 %v2777_v26 }
  0x40   : > { %595 = vmatpush.bf16.msra.mxu1 %v2670_v27  ;;  %607 = vmatpush.bf16.msra.mxu2 %v2690_v56 }
  0x41   : > { %475 = vmatpush.bf16.msra.mxu0 %v2776_v30 }
  0x44   : > { %596 = vmatpush.bf16.msra.mxu1 %v2662_v32  ;;  %476 = vmatmul.bf16.vlgmr.msra.gmra.mxu0 %v400_v35 }
  0x45   : > { %608 = vmatpush.bf16.msra.mxu2 %v2682_v59 }
  0x47   : > { %597 = vmatmul.bf16.vlgmr.msra.gmra.mxu1 %v403_v36 }
  0x49   : > { %609 = vmatpush.bf16.msra.mxu2 %v2674_v62 }
  0x4d   : > { %610 = vmatpush.bf16.msra.mxu2 %v2666_v1 }
  0x50   : > { %611 = vmatmul.bf16.vlgmr.msra.gmra.mxu2 %v403_v36 }
  0xc1   : > { %v477_v42 = vpop.f32.mrf.mxu0 }
  0xc2   : > { %481 = vrot.lane.b32.xlu0 %v477_v42, %s3160_s16  ;;  %v486_v9 = vmul.f32 %v485_v6, %v477_v42  ;;  %s2772_s16 = sshll.u32 %s3242_s13, 3 }
  0xc4   : > { %v3315_v44 = vpop.f32.mrf.mxu1 }
  0xc5   : > { %v918_v35 = vrot.slane %v3315_v44, 4 }
  0xc9   : > { %v479_v50 = vpop.f32.mrf.mxu0 }
  0xca   : > { %483 = vrot.lane.b32.xlu0 %v477_v42, %s3161_s17  ;;  %v3170_v42 = vmov 1934713408   ;;  %s2623_s17 = sshll.u32 %s386_s14, 3 }
  0xcb   : > { %v693_v43 = vunpack.c.l.s4 %v3170_v42 }
  0xcc   : > { %v3317_v52 = vpop.f32.mrf.mxu1 }
  0xcd   : > { %v2893_v55 = vpack.i.bf16 %v3317_v52, %v3315_v44  ;;  %v3373_v63 = vunpack.c.0.s8 %v693_v43 }
  0xcf   : > { %2894 = vrot.lane.b32.xlu1 %v2893_v55, %s3162_s22  ;;  %2904 = vrot.lane.b32.xlu2 %v2893_v55, %s3163_s23 }
  0xd2   : > { %2914 = vrot.lane.b32.xlu0 %v2893_v55, %s3164_s25 }
  0xd7   : > { %2899 = vrot.lane.b32.xlu1 %v2893_v55, %s3165_s28  ;;  %2909 = vrot.lane.b32.xlu2 %v2893_v55, %s3166_s29 }
  0xdf   : > { %2919 = vrot.lane.b32.xlu1 %v2893_v55, %s3167_s2  ;;  %2924 = vrot.lane.b32.xlu2 %v2893_v55, %s3168_s3 }
 0x129   : > { %v3328_v2 = vpop.permute.xlu2 %2904 }
 0x12a   : > { %v2906_v50 = vunpack.i.l.bf16 %v3328_v2 }
 0x131   : > { %v2910_v5 = vpop.permute.xlu2 %2909 }
 0x132   : > { %v2911_v11 = vunpack.i.l.bf16 %v2910_v5  ;;  %v2912_v14 = vunpack.i.h.bf16 %v2910_v5 }
 0x134   : > { %v482_v3 = vpop.permute.xlu0 %481  ;;  %v928_v20 = vrot.slane %v2911_v11, 4  ;;  %v1034_v23 = vrot.slane %v2912_v14, 4 }
 0x135   : > { %v488_v7 = vmul.f32 %v487_v4, %v482_v3 }
 0x137   : > { %v489_v12 = vadd.f32 %v488_v7, %v486_v9  ;;  %v2907_v9 = vunpack.i.h.bf16 %v3328_v2 }
 0x139   : > { %v2925_v21 = vpop.permute.xlu2 %2924 }
 0x13a   : > { %v2927_v26 = vunpack.i.h.bf16 %v2925_v21  ;;  %v2926_v32 = vunpack.i.l.bf16 %v2925_v21 }
 0x13c   : > { %v484_v10 = vpop.permute.xlu0 %483  ;;  %v1046_v37 = vrot.slane %v2927_v26, 4  ;;  %v952_v49 = vrot.slane %v2926_v32, 4 }
 0x13d   : > { %v491_v13 = vmul.f32 %v490_v8, %v484_v10  ;;  %v942_v10 = vrot.slane %v2906_v50, 4 }
 0x13f   : > { %v3339_v15 = vadd.f32 %v491_v13, %v489_v12 }
 0x141   : > { %v2895_v16 = vpop.permute.xlu1 %2894  ;;  %627 = vrot.lane.b32.xlu2 %v3339_v15, %s3163_s23  ;;  %621 = vrot.lane.b32.xlu1 %v3339_v15, %s3165_s28 }
 0x142   : > { %v2896_v19 = vunpack.i.l.bf16 %v2895_v16  ;;  %v2897_v22 = vunpack.i.h.bf16 %v2895_v16  ;;  %618 = vrot.lane.b32.xlu0 %v3339_v15, %s3162_s22 }
 0x144   : > { %v930_v24 = vrot.slane %v2896_v19, 4  ;;  %v929_v27 = vsel %vm640_vm0, %v928_v20, %v2896_v19  ;;  %v2915_v29 = vpop.permute.xlu0 %2914  ;;  %v1035_v30 = vsel %vm640_vm0, %v1034_v23, %v2897_v22 }
 0x145   : > { %v2916_v31 = vunpack.i.l.bf16 %v2915_v29  ;;  %v935_v33 = vperm.slane %v929_v27, %v3347_v25  ;;  %v1039_v38 = vperm.slane %v1035_v30, %v3347_v25  ;;  %v2917_v41 = vunpack.i.h.bf16 %v2915_v29 }
 0x146   : > { %v931_v28 = vsel %vm640_vm0, %v2911_v11, %v930_v24 }
 0x147   : > { %v939_v34 = vperm.slane %v931_v28, %v3347_v25  ;;  %v954_v45 = vrot.slane %v2916_v31, 4  ;;  %v964_v51 = vrot.slane %v935_v33, 4  ;;  %v1052_v55 = vrot.slane %v1039_v38, 4 }
 0x148   : > { %v1047_v58 = vsel %vm640_vm0, %v1046_v37, %v2917_v41  ;;  %v953_v0 = vsel %vm640_vm0, %v952_v49, %v2916_v31 }
 0x149   : > { %v2900_v36 = vpop.permute.xlu1 %2899  ;;  %633 = vrot.lane.b32.xlu2 %v3339_v15, %s3167_s2  ;;  %630 = vrot.lane.b32.xlu1 %v3339_v15, %s3164_s25  ;;  %v976_v53 = vrot.slane %v939_v34, 4  ;;  %v955_v62 = vsel %vm640_vm0, %v2926_v32, %v954_v45  ;;  %v1051_v8 = vperm.slane %v1047_v58, %v3347_v25  ;;  %v959_v17 = vperm.slane %v953_v0, %v3347_v25 }
 0x14a   : > { %v2902_v39 = vunpack.i.h.bf16 %v2900_v36  ;;  %v2901_v40 = vunpack.i.l.bf16 %v2900_v36  ;;  %624 = vrot.lane.b32.xlu0 %v3339_v15, %s3166_s29  ;;  %v963_v7 = vperm.slane %v955_v62, %v3347_v25 }
 0x14b   : > { %v1064_v23 = vrot.slane %v1051_v8, 4  ;;  %v988_v30 = vrot.slane %v959_v17, 4 }
 0x14c   : > { %v1028_v46 = vrot.slane %v2902_v39, 4  ;;  %v916_v47 = vrot.slane %v2901_v40, 4  ;;  %v919_v48 = vsel %vm640_vm0, %v2901_v40, %v918_v35  ;;  %v1000_v22 = vrot.slane %v963_v7, 4 }
 0x14d   : > { %v927_v54 = vperm.slane %v919_v48, %v3347_v25 }
 0x14e   : > { %v1029_v56 = vsel %vm640_vm0, %v1028_v46, %v3317_v52  ;;  %v917_v57 = vsel %vm640_vm0, %v916_v47, %v3315_v44 }
 0x14f   : > { %v1033_v59 = vperm.slane %v1029_v56, %v3347_v25  ;;  %v923_v60 = vperm.slane %v917_v57, %v3347_v25  ;;  %v978_v61 = vrot.slane %v927_v54, 4  ;;  %v977_v4 = vsel %vm640_vm0, %v976_v53, %v927_v54 }
 0x150   : > { %v983_v14 = vperm.slane %v977_v4, %v3373_v63 }
 0x151   : > { %v1054_v1 = vrot.slane %v1033_v59, 4  ;;  %v965_v3 = vsel %vm640_vm0, %v964_v51, %v923_v60  ;;  %v966_v52 = vrot.slane %v923_v60, 4  ;;  %v2920_v44 = vpop.permute.xlu1 %2919  ;;  %v979_v5 = vsel %vm640_vm0, %v939_v34, %v978_v61 }
 0x152   : > { %v1053_v6 = vsel %vm640_vm0, %v1052_v55, %v1033_v59  ;;  %v2922_v12 = vunpack.i.h.bf16 %v2920_v44  ;;  %v971_v13 = vperm.slane %v965_v3, %v3373_v63  ;;  %636 = vrot.lane.b32.xlu0 %v3339_v15, %s3168_s3  ;;  %v987_v18 = vperm.slane %v979_v5, %v3373_v63 }
 0x153   : > { %v967_v11 = vsel %vm640_vm0, %v935_v33, %v966_v52  ;;  %v1055_v16 = vsel %vm640_vm0, %v1039_v38, %v1054_v1  ;;  %v1059_v19 = vperm.slane %v1053_v6, %v3373_v63  ;;  %v2921_v20 = vunpack.i.l.bf16 %v2920_v44 }
 0x154   : > { %v1040_v2 = vrot.slane %v2922_v12, 4  ;;  %v975_v21 = vperm.slane %v967_v11, %v3373_v63  ;;  %v1063_v24 = vperm.slane %v1055_v16, %v3373_v63  ;;  %v1022_v29 = vrot.slane %v983_v14, 4 }
 0x155   : > { %v940_v27 = vrot.slane %v2921_v20, 4  ;;  %v943_v28 = vsel %vm640_vm0, %v2921_v20, %v942_v10  ;;  %v1014_v33 = vrot.slane %v971_v13, 4  ;;  %v1026_v34 = vrot.slane %v987_v18, 4 }
 0x156   : > { %v1041_v26 = vsel %vm640_vm0, %v1040_v2, %v2907_v9  ;;  %v951_v32 = vperm.slane %v943_v28, %v3347_v25  ;;  %v1078_v35 = vrot.slane %v1059_v19, 4  ;;  %v1018_v41 = vrot.slane %v975_v21, 4 }
 0x157   : > { %v1045_v31 = vperm.slane %v1041_v26, %v3347_v25  ;;  %v941_v36 = vsel %vm640_vm0, %v940_v27, %v2906_v50  ;;  %v1082_v42 = vrot.slane %v1063_v24, 4 }
 0x158   : > { %v947_v38 = vperm.slane %v941_v36, %v3347_v25  ;;  %v1001_v39 = vsel %vm640_vm0, %v1000_v22, %v951_v32  ;;  %v1002_v40 = vrot.slane %v951_v32, 4 }
 0x159   : > { %v1066_v37 = vrot.slane %v1045_v31, 4  ;;  %v1007_v43 = vperm.slane %v1001_v39, %v3373_v63  ;;  %v1065_v45 = vsel %vm640_vm0, %v1064_v23, %v1045_v31 }
 0x15a   : > { %v989_v46 = vsel %vm640_vm0, %v988_v30, %v947_v38  ;;  %v990_v47 = vrot.slane %v947_v38, 4  ;;  %v1003_v48 = vsel %vm640_vm0, %v963_v7, %v1002_v40  ;;  %v1071_v56 = vperm.slane %v1065_v45, %v3373_v63 }
 0x15b   : > { %v1067_v49 = vsel %vm640_vm0, %v1051_v8, %v1066_v37  ;;  %v995_v50 = vperm.slane %v989_v46, %v3373_v63  ;;  %v1011_v51 = vperm.slane %v1003_v48, %v3373_v63  ;;  %v1020_v53 = vrot.slane %v1007_v43, 4 }
 0x15c   : > { %v1023_v54 = vsel %vm640_vm0, %v1007_v43, %v1022_v29  ;;  %v991_v55 = vsel %vm640_vm0, %v959_v17, %v990_v47  ;;  %v1075_v57 = vperm.slane %v1067_v49, %v3373_v63  ;;  %v1076_v3 = vrot.slane %v1071_v56, 4 }
 0x15d   : > { %v1122_v58 = vrot.slane %v1023_v54, 4  ;;  %v999_v59 = vperm.slane %v991_v55, %v3373_v63  ;;  %v1012_v60 = vrot.slane %v995_v50, 4  ;;  %v1015_v61 = vsel %vm640_vm0, %v995_v50, %v1014_v33 }
 0x15e   : > { %v1021_v62 = vsel %vm640_vm0, %v1020_v53, %v983_v14  ;;  %v1024_v0 = vrot.slane %v1011_v51, 4  ;;  %v1027_v1 = vsel %vm640_vm0, %v1011_v51, %v1026_v34  ;;  %v1079_v52 = vsel %vm640_vm0, %v1071_v56, %v1078_v35 }
 0x15f   : > { %v1013_v4 = vsel %vm640_vm0, %v1012_v60, %v971_v13  ;;  %v1016_v44 = vrot.slane %v999_v59, 4  ;;  %v1080_v5 = vrot.slane %v1075_v57, 4  ;;  %v1098_v6 = vrot.slane %v1015_v61, 4 }
 0x160   : > { %v1110_v7 = vrot.slane %v1021_v62, 4  ;;  %v1120_v8 = vrot.slane %v1027_v1, 4  ;;  %v1210_v9 = vrot.slane %v1079_v52, 4  ;;  %v1019_v10 = vsel %vm640_vm0, %v999_v59, %v1018_v41 }
 0x161   : > { %v1017_v11 = vsel %vm640_vm0, %v1016_v44, %v975_v21  ;;  %v1025_v12 = vsel %vm640_vm0, %v1024_v0, %v987_v18  ;;  %v1077_v14 = vsel %vm640_vm0, %v1076_v3, %v1059_v19  ;;  %v1081_v16 = vsel %vm640_vm0, %v1080_v5, %v1063_v24 }
 0x162   : > { %v1083_v17 = vsel %vm640_vm0, %v1075_v57, %v1082_v42  ;;  %v1084_v2 = vrot.slane %v1017_v11, 4  ;;  %v1086_v13 = vrot.slane %v1013_v4, 4  ;;  %v1096_v20 = vrot.slane %v1019_v10, 4 }
 0x163   : > { %v1099_v22 = vsel %vm640_vm0, %v1019_v10, %v1098_v6  ;;  %v1108_v23 = vrot.slane %v1025_v12, 4  ;;  %v1111_v26 = vsel %vm640_vm0, %v1025_v12, %v1110_v7  ;;  %v1123_v27 = vsel %vm640_vm0, %v1027_v1, %v1122_v58 }
 0x164   : > { %v1087_v21 = vsel %vm640_vm0, %v1017_v11, %v1086_v13  ;;  %v3429_v18 = vperm.slane %v1099_v22, %v3347_v25  ;;  %v3432_v19 = vperm.slane %v1111_v26, %v3347_v25  ;;  %v3435_v24 = vperm.slane %v1123_v27, %v3347_v25 }
 0x165   : > { %v3438_v28 = vperm.slane %v1087_v21, %v3347_v25  ;;  %v1196_v29 = vrot.slane %v1081_v16, 4  ;;  %v1198_v30 = vrot.slane %v1077_v14, 4  ;;  %v1208_v31 = vrot.slane %v1083_v17, 4 }
 0x166   : > { %v1144_v32 = vrot.slane %v3429_v18, 4  ;;  %v1168_v33 = vrot.slane %v3435_v24, 4  ;;  %v1211_v34 = vsel %vm640_vm0, %v1083_v17, %v1210_v9  ;;  %v1085_v35 = vsel %vm640_vm0, %v1084_v2, %v1013_v4 }
 0x167   : > { %v1146_v36 = vrot.slane %v3438_v28, 4  ;;  %v1199_v37 = vsel %vm640_vm0, %v1081_v16, %v1198_v30  ;;  %v3447_v38 = vperm.slane %v1211_v34, %v3347_v25  ;;  %v1091_v39 = vperm.slane %v1085_v35, %v3347_v25 }
 0x168   : > { %v1145_v40 = vsel %vm640_vm0, %v1144_v32, %v3438_v28  ;;  %v1169_v41 = vsel %vm640_vm0, %v1168_v33, %v3432_v19  ;;  %v3455_v42 = vperm.slane %v1199_v37, %v3347_v25  ;;  %v1097_v43 = vsel %vm640_vm0, %v1096_v20, %v1015_v61 }
 0x169   : > { %v1151_v45 = vperm.slane %v1145_v40, %v3373_v63  ;;  %v1175_v46 = vperm.slane %v1169_v41, %v3373_v63  ;;  %v1232_v47 = vrot.slane %v3447_v38, 4  ;;  %v1103_v48 = vperm.slane %v1097_v43, %v3347_v25 }
 0x16a   : > { %v1234_v49 = vrot.slane %v3455_v42, 4  ;;  %v1109_v50 = vsel %vm640_vm0, %v1108_v23, %v1021_v62  ;;  %v1121_v51 = vsel %vm640_vm0, %v1120_v8, %v1023_v54  ;;  %v1134_v53 = vrot.slane %v1091_v39, 4 }
 0x16b   : > { %v1188_v55 = vrot.slane %v1175_v46, 4  ;;  %v1190_v56 = vrot.slane %v1151_v45, 4  ;;  %v1233_v57 = vsel %vm640_vm0, %v1232_v47, %v3455_v42  ;;  %v1115_v58 = vperm.slane %v1109_v50, %v3347_v25 }
 0x16c   : > { %v1239_v59 = vperm.slane %v1233_v57, %v3373_v63  ;;  %v1127_v60 = vperm.slane %v1121_v51, %v3347_v25  ;;  %v1132_v61 = vrot.slane %v1103_v48, 4  ;;  %v1197_v0 = vsel %vm640_vm0, %v1196_v29, %v1077_v14 }
 0x16d   : > { %v1189_v1 = vsel %vm640_vm0, %v1188_v55, %v1151_v45  ;;  %v1203_v62 = vperm.slane %v1197_v0, %v3347_v25  ;;  %v1209_v54 = vsel %vm640_vm0, %v1208_v31, %v1079_v52  ;;  %v1191_v3 = vsel %vm640_vm0, %v1175_v46, %v1190_v56 }
 0x16e   : > { %v1248_v4 = vrot.slane %v1239_v59, 4  ;;  %v1260_v44 = vpack.c.bf16 %v1189_v1, %v1189_v1  ;;  %v1261_v5 = vpack.c.bf16 %v1239_v59, %v1239_v59  ;;  %v1133_v6 = vsel %vm640_vm0, %v1132_v61, %v1091_v39 }
 0x16f   : > { %v1139_v7 = vperm.slane %v1133_v6, %v3373_v63  ;;  %v1156_v8 = vrot.slane %v1127_v60, 4  ;;  %v1215_v9 = vperm.slane %v1209_v54, %v3347_v25  ;;  %v1222_v10 = vrot.slane %v1203_v62, 4 }
 0x170   : > { %v1763_v11 = vunpack.c.l.b16 %v1260_v44  ;;  %v1764_v12 = vunpack.c.l.b16 %v1261_v5  ;;  %v1249_v14 = vsel %vm640_vm0, 0.0, %v1248_v4  ;;  %v1262_v16 = vpack.c.bf16 %v1191_v3, %v1191_v3 }
 0x171   : > { %v1157_v52 = vsel %vm640_vm0, %v1156_v8, %v1115_v58  ;;  %v1220_v17 = vrot.slane %v1215_v9, 4  ;;  %v1263_v2 = vpack.c.bf16 %v1249_v14, %v1249_v14  ;;  %v1182_v13 = vrot.slane %v1139_v7, 4 }
 0x172   : > { %v1765_v20 = vpack.c.b16 %v1764_v12, %v1763_v11  ;;  %v1163_v22 = vperm.slane %v1157_v52, %v3373_v63  ;;  %v1787_v23 = vunpack.c.l.b16 %v1262_v16  ;;  %v1135_v26 = vsel %vm640_vm0, %v1103_v48, %v1134_v53 }
 0x173   : > { %v1221_v27 = vsel %vm640_vm0, %v1220_v17, %v1203_v62  ;;  %v1788_v21 = vunpack.c.l.b16 %v1263_v2  ;;  %v1143_v29 = vperm.slane %v1135_v26, %v3373_v63  ;;  %v1158_v30 = vrot.slane %v1115_v58, 4 }
 0x174   : > { %v1770_v31 = vsel %vm1669_vm1, %v1765_v20, 0  ;;  %v1180_v32 = vrot.slane %v1163_v22, 4  ;;  %v1227_v33 = vperm.slane %v1221_v27, %v3373_v63  ;;  %v1183_v34 = vsel %vm640_vm0, %v1163_v22, %v1182_v13 }
 0x175   : > { %1779 = vmatpush.bf16.xpose.msrb.mxu2 %v1770_v31  ;;  %v1789_v35 = vpack.c.b16 %v1788_v21, %v1787_v23  ;;  %v1254_v37 = vpack.c.bf16 %v1183_v34, %v1183_v34  ;;  %v1159_v39 = vsel %vm640_vm0, %v1127_v60, %v1158_v30  ;;  %v1186_v40 = vrot.slane %v1143_v29, 4 }
 0x176   : > { %v1181_v41 = vsel %vm640_vm0, %v1180_v32, %v1139_v7  ;;  %v1253_v43 = vpack.c.bf16 %v1227_v33, %v1227_v33  ;;  %v1244_v45 = vrot.slane %v1227_v33, 4  ;;  %v1167_v46 = vperm.slane %v1159_v39, %v3373_v63 }
 0x177   : > { %v1252_v47 = vpack.c.bf16 %v1181_v41, %v1181_v41  ;;  %v1794_v48 = vsel %vm1669_vm1, %v1789_v35, 0  ;;  %v1691_v50 = vunpack.c.l.b16 %v1254_v37  ;;  %v1223_v51 = vsel %vm640_vm0, %v1215_v9, %v1222_v10 }
 0x178   : > { %v1667_v53 = vunpack.c.l.b16 %v1253_v43  ;;  %v1245_v55 = vsel %vm640_vm0, 0.0, %v1244_v45  ;;  %v1184_v56 = vrot.slane %v1167_v46, 4  ;;  %v1187_v57 = vsel %vm640_vm0, %v1167_v46, %v1186_v40 }
 0x179   : > { %v1666_v58 = vunpack.c.l.b16 %v1252_v47  ;;  %v1255_v59 = vpack.c.bf16 %v1245_v55, %v1245_v55  ;;  %v1231_v60 = vperm.slane %v1223_v51, %v3373_v63  ;;  %v1258_v61 = vpack.c.bf16 %v1187_v57, %v1187_v57 }
 0x17a   : > { %v1147_v0 = vsel %vm640_vm0, %v3429_v18, %v1146_v36  ;;  %v1170_v1 = vrot.slane %v3432_v19, 4  ;;  %v1235_v62 = vsel %vm640_vm0, %v3447_v38, %v1234_v49  ;;  %v1185_v54 = vsel %vm640_vm0, %v1184_v56, %v1143_v29  ;;  %v3509_v36 = vpop.f32.mrf.mxu2 }
 0x17b   : > { %v1668_v3 = vpack.c.b16 %v1667_v53, %v1666_v58  ;;  %v1692_v4 = vunpack.c.l.b16 %v1255_v59  ;;  %v1246_v44 = vrot.slane %v1231_v60, 4  ;;  %v1739_v5 = vunpack.c.l.b16 %v1258_v61  ;;  %1294 = vrot.lane.b32.xlu0 %v3509_v36, %s3164_s25 }
 0x17c   : > { %v1155_v6 = vperm.slane %v1147_v0, %v3373_v63  ;;  %v1171_v28 = vsel %vm640_vm0, %v3435_v24, %v1170_v1  ;;  %v1243_v18 = vperm.slane %v1235_v62, %v3373_v63  ;;  %v1256_v19 = vpack.c.bf16 %v1185_v54, %v1185_v54 }
 0x17d   : > { %1803 = vmatpush.bf16.xpose.msra.mxu2 %v1794_v48  ;;  %v1674_v42 = vsel %vm1669_vm1, %v1668_v3, 0  ;;  %v1693_v7 = vpack.c.b16 %v1692_v4, %v1691_v50  ;;  %v1247_v38 = vsel %vm640_vm0, 0.0, %v1246_v44  ;;  %v1179_v49 = vperm.slane %v1171_v28, %v3373_v63 }
 0x17e   : > { %1683 = vmatpush.bf16.xpose.msra.mxu3 %v1674_v42  ;;  %v1259_v8 = vpack.c.bf16 %v1247_v38, %v1247_v38  ;;  %v1194_v9 = vrot.slane %v1155_v6, 4  ;;  %v1250_v10 = vrot.slane %v1243_v18, 4  ;;  %v1257_v24 = vpack.c.bf16 %v1231_v60, %v1231_v60 }
 0x17f   : > { %v1698_v11 = vsel %vm1669_vm1, %v1693_v7, 0  ;;  %v3517_v12 = vunpack.c.l.b16 %v1256_v19  ;;  %v1192_v14 = vrot.slane %v1179_v49, 4  ;;  %v1265_v16 = vpack.c.bf16 %v1243_v18, %v1243_v18 }
 0x180   : > { %v1740_v52 = vunpack.c.l.b16 %v1259_v8  ;;  %v1195_v17 = vsel %vm640_vm0, %v1179_v49, %v1194_v9  ;;  %v1251_v2 = vsel %vm640_vm0, 0.0, %v1250_v10  ;;  %v3521_v13 = vunpack.c.l.b16 %v1257_v24 }
 0x181   : > { %v1266_v20 = vpack.c.bf16 %v1195_v17, %v1195_v17  ;;  %v1267_v22 = vpack.c.bf16 %v1251_v2, %v1251_v2  ;;  %v1193_v23 = vsel %vm640_vm0, %v1192_v14, %v1155_v6  ;;  %v3526_v29 = vunpack.c.l.b16 %v1265_v16 }
 0x182   : > { %v1741_v26 = vpack.c.b16 %v1740_v52, %v1739_v5  ;;  %v1717_v27 = vpack.c.b16 %v3521_v13, %v3517_v12  ;;  %v1264_v21 = vpack.c.bf16 %v1193_v23, %v1193_v23  ;;  %v3534_v39 = vpop.f32.mrf.mxu2  ;;  %v642_v47 = vrot.slane %v3339_v15, 4 }
 0x183   : > { %v1835_v30 = vunpack.c.l.b16 %v1266_v20  ;;  %v1836_v31 = vunpack.c.l.b16 %v1267_v22  ;;  %v2928_v40 = vpack.i.bf16 %v3534_v39, %v3509_v36 }
 0x184   : > { %v1746_v32 = vsel %vm1669_vm1, %v1741_v26, 0  ;;  %v3529_v33 = vunpack.c.l.b16 %v1264_v21 }
 0x185   : > { %1755 = vmatpush.bf16.xpose.msrb.mxu0 %v1746_v32  ;;  %v1837_v34 = vpack.c.b16 %v1836_v31, %v1835_v30  ;;  %2929 = vrot.lane.b32.xlu1 %v2928_v40, %s3163_s23 }
 0x186   : > { %1707 = vmatpush.bf16.xpose.msrb.mxu3 %v1698_v11  ;;  %v1813_v35 = vpack.c.b16 %v3526_v29, %v3529_v33  ;;  %2949 = vrot.lane.b32.xlu0 %v2928_v40, %s3162_s22 }
 0x187   : > { %v1842_v37 = vsel %vm1669_vm1, %v1837_v34, 0  ;;  %2934 = vrot.lane.b32.xlu2 %v2928_v40, %s3165_s28 }
 0x18d   : > { %1851 = vmatpush.bf16.xpose.msra.mxu0 %v1842_v37  ;;  %2939 = vrot.lane.b32.xlu1 %v2928_v40, %s3167_s2 }
 0x18f   : > { %2944 = vrot.lane.b32.xlu2 %v2928_v40, %s3166_s29 }
 0x195   : > { %2954 = vrot.lane.b32.xlu1 %v2928_v40, %s3168_s3 }
 0x197   : > { %1296 = vrot.lane.b32.xlu2 %v3534_v39, %s3164_s25 }
 0x19b   : > { %v628_v41 = vpop.permute.xlu2 %627 }
 0x19c   : > { %v666_v55 = vrot.slane %v628_v41, 4 }
 0x1a3   : > { %v634_v50 = vpop.permute.xlu2 %633 }
 0x1a4   : > { %v664_v58 = vrot.slane %v634_v50, 4  ;;  %v667_v1 = vsel %vm640_vm0, %v634_v50, %v666_v55 }
 0x1a5   : > { %v675_v6 = vperm.slane %v667_v1, %v3347_v25 }
 0x1a6   : > { %v665_v4 = vsel %vm640_vm0, %v664_v58, %v628_v41 }
 0x1a7   : > { %v671_v42 = vperm.slane %v665_v4, %v3347_v25  ;;  %v726_v24 = vrot.slane %v675_v6, 4 }
 0x1a9   : > { %v714_v20 = vrot.slane %v671_v42, 4 }
 0x1b3   : > { %v622_v43 = vpop.permute.xlu1 %621 }
 0x1b4   : > { %v619_v45 = vpop.permute.xlu0 %618  ;;  %v639_v46 = vrot.slane %v622_v43, 4  ;;  %v643_v48 = vsel %vm640_vm0, %v622_v43, %v642_v47 }
 0x1b5   : > { %v654_v53 = vrot.slane %v619_v45, 4  ;;  %v651_v56 = vperm.slane %v643_v48, %v3347_v25 }
 0x1b6   : > { %v641_v51 = vsel %vm640_vm0, %v639_v46, %v3339_v15 }
 0x1b7   : > { %v647_v59 = vperm.slane %v641_v51, %v3347_v25  ;;  %v702_v54 = vrot.slane %v651_v56, 4 }
 0x1b9   : > { %v690_v44 = vrot.slane %v647_v59, 4 }
 0x1bb   : > { %v631_v5 = vpop.permute.xlu1 %630 }
 0x1bc   : > { %v625_v57 = vpop.permute.xlu0 %624  ;;  %v678_v7 = vrot.slane %v631_v5, 4 }
 0x1bd   : > { %v652_v60 = vrot.slane %v625_v57, 4  ;;  %v655_v61 = vsel %vm640_vm0, %v625_v57, %v654_v53 }
 0x1be   : > { %v663_v0 = vperm.slane %v655_v61, %v3347_v25 }
 0x1bf   : > { %v653_v62 = vsel %vm640_vm0, %v652_v60, %v619_v45 }
 0x1c0   : > { %v659_v15 = vperm.slane %v653_v62, %v3347_v25  ;;  %v700_v3 = vrot.slane %v663_v0, 4  ;;  %v703_v18 = vsel %vm640_vm0, %v663_v0, %v702_v54 }
 0x1c1   : > { %v711_v9 = vperm.slane %v703_v18, %v3373_v63 }
 0x1c2   : > { %v688_v28 = vrot.slane %v659_v15, 4  ;;  %v691_v19 = vsel %vm640_vm0, %v659_v15, %v690_v44  ;;  %v701_v49 = vsel %vm640_vm0, %v700_v3, %v651_v56 }
 0x1c3   : > { %v699_v11 = vperm.slane %v691_v19, %v3373_v63  ;;  %v707_v52 = vperm.slane %v701_v49, %v3373_v63  ;;  %v750_v23 = vrot.slane %v711_v9, 4 }
 0x1c4   : > { %v689_v38 = vsel %vm640_vm0, %v688_v28, %v647_v59  ;;  %v637_v8 = vpop.permute.xlu0 %636 }
 0x1c5   : > { %v676_v10 = vrot.slane %v637_v8, 4  ;;  %v679_v14 = vsel %vm640_vm0, %v637_v8, %v678_v7  ;;  %v695_v16 = vperm.slane %v689_v38, %v3373_v63  ;;  %v742_v30 = vrot.slane %v699_v11, 4 }
 0x1c6   : > { %v687_v2 = vperm.slane %v679_v14, %v3347_v25  ;;  %v746_v40 = vrot.slane %v707_v52, 4 }
 0x1c7   : > { %v677_v17 = vsel %vm640_vm0, %v676_v10, %v631_v5  ;;  %v738_v37 = vrot.slane %v695_v16, 4 }
 0x1c8   : > { %v683_v22 = vperm.slane %v677_v17, %v3347_v25  ;;  %v724_v26 = vrot.slane %v687_v2, 4  ;;  %v727_v21 = vsel %vm640_vm0, %v687_v2, %v726_v24 }
 0x1c9   : > { %v735_v34 = vperm.slane %v727_v21, %v3373_v63 }
 0x1ca   : > { %v712_v31 = vrot.slane %v683_v22, 4  ;;  %v715_v32 = vsel %vm640_vm0, %v683_v22, %v714_v20  ;;  %v725_v43 = vsel %vm640_vm0, %v724_v26, %v675_v6 }
 0x1cb   : > { %v723_v41 = vperm.slane %v715_v32, %v3373_v63  ;;  %v731_v46 = vperm.slane %v725_v43, %v3373_v63  ;;  %v748_v47 = vrot.slane %v735_v34, 4  ;;  %v751_v48 = vsel %vm640_vm0, %v735_v34, %v750_v23 }
 0x1cc   : > { %v713_v45 = vsel %vm640_vm0, %v712_v31, %v671_v42  ;;  %v788_v55 = vrot.slane %v751_v48, 4 }
 0x1cd   : > { %v719_v50 = vperm.slane %v713_v45, %v3373_v63  ;;  %v740_v51 = vrot.slane %v723_v41, 4  ;;  %v743_v53 = vsel %vm640_vm0, %v723_v41, %v742_v30  ;;  %v744_v56 = vrot.slane %v731_v46, 4 }
 0x1ce   : > { %v747_v57 = vsel %vm640_vm0, %v731_v46, %v746_v40  ;;  %v749_v58 = vsel %vm640_vm0, %v748_v47, %v711_v9  ;;  %v764_v59 = vrot.slane %v743_v53, 4 }
 0x1cf   : > { %v736_v60 = vrot.slane %v719_v50, 4  ;;  %v739_v61 = vsel %vm640_vm0, %v719_v50, %v738_v37  ;;  %v741_v0 = vsel %vm640_vm0, %v740_v51, %v699_v11  ;;  %v776_v1 = vrot.slane %v749_v58, 4 }
 0x1d0   : > { %v745_v62 = vsel %vm640_vm0, %v744_v56, %v707_v52  ;;  %v766_v54 = vrot.slane %v739_v61, 4  ;;  %v789_v15 = vsel %vm640_vm0, %v788_v55, %v747_v57  ;;  %v790_v3 = vrot.slane %v747_v57, 4 }
 0x1d1   : > { %v778_v4 = vrot.slane %v745_v62, 4  ;;  %v795_v44 = vperm.slane %v789_v15, %v3347_v25  ;;  %v737_v5 = vsel %vm640_vm0, %v736_v60, %v695_v16  ;;  %v752_v6 = vrot.slane %v741_v0, 4 }
 0x1d2   : > { %v767_v28 = vsel %vm640_vm0, %v743_v53, %v766_v54  ;;  %v791_v18 = vsel %vm640_vm0, %v751_v48, %v790_v3  ;;  %v754_v19 = vrot.slane %v737_v5, 4  ;;  %v765_v42 = vsel %vm640_vm0, %v764_v59, %v739_v61 }
 0x1d3   : > { %v779_v7 = vsel %vm640_vm0, %v749_v58, %v778_v4  ;;  %v799_v38 = vperm.slane %v791_v18, %v3347_v25  ;;  %v753_v49 = vsel %vm640_vm0, %v752_v6, %v737_v5  ;;  %v771_v8 = vperm.slane %v765_v42, %v3347_v25 }
 0x1d4   : > { %v787_v9 = vperm.slane %v779_v7, %v3347_v25  ;;  %v759_v10 = vperm.slane %v753_v49, %v3347_v25  ;;  %v777_v24 = vsel %vm640_vm0, %v776_v1, %v745_v62  ;;  %v824_v11 = vrot.slane %v795_v44, 4 }
 0x1d5   : > { %v836_v14 = vrot.slane %v799_v38, 4  ;;  %v783_v16 = vperm.slane %v777_v24, %v3347_v25  ;;  %v800_v52 = vrot.slane %v771_v8, 4  ;;  %v755_v17 = vsel %vm640_vm0, %v741_v0, %v754_v19 }
 0x1d6   : > { %v802_v2 = vrot.slane %v759_v10, 4  ;;  %v763_v20 = vperm.slane %v755_v17, %v3347_v25  ;;  %v775_v22 = vperm.slane %v767_v28, %v3347_v25  ;;  %v1722_v60 = vsel %vm1669_vm1, %v1717_v27, 0 }
 0x1d7   : > { %v801_v23 = vsel %vm640_vm0, %v800_v52, %v759_v10  ;;  %v825_v26 = vsel %vm640_vm0, %v824_v11, %v783_v16  ;;  %v837_v21 = vsel %vm640_vm0, %v836_v14, %v787_v9  ;;  %v826_v30 = vrot.slane %v783_v16, 4 }
 0x1d8   : > { %v807_v31 = vperm.slane %v801_v23, %v3373_v63  ;;  %v831_v32 = vperm.slane %v825_v26, %v3373_v63  ;;  %v812_v34 = vrot.slane %v775_v22, 4  ;;  %v843_v37 = vperm.slane %v837_v21, %v3373_v63 }
 0x1d9   : > { %v803_v40 = vsel %vm640_vm0, %v771_v8, %v802_v2  ;;  %v827_v41 = vsel %vm640_vm0, %v795_v44, %v826_v30  ;;  %v814_v56 = vrot.slane %v763_v20, 4  ;;  %v838_v1 = vrot.slane %v787_v9, 4 }
 0x1da   : > { %v848_v43 = vrot.slane %v831_v32, 4  ;;  %v813_v45 = vsel %vm640_vm0, %v812_v34, %v763_v20  ;;  %v811_v46 = vperm.slane %v803_v40, %v3373_v63  ;;  %v856_v48 = vrot.slane %v843_v37, 4 }
 0x1db   : > { %v819_v47 = vperm.slane %v813_v45, %v3373_v63  ;;  %v835_v51 = vperm.slane %v827_v41, %v3373_v63  ;;  %v815_v0 = vsel %vm640_vm0, %v775_v22, %v814_v56  ;;  %v850_v54 = vrot.slane %v807_v31, 4 }
 0x1dc   : > { %v849_v50 = vsel %vm640_vm0, %v848_v43, %v807_v31  ;;  %v854_v53 = vrot.slane %v811_v46, 4  ;;  %v823_v62 = vperm.slane %v815_v0, %v3373_v63  ;;  %v839_v3 = vsel %vm640_vm0, %v799_v38, %v838_v1 }
 0x1dd   : > { %v864_v55 = vpack.c.bf16 %v849_v50, %v849_v50  ;;  %v857_v57 = vsel %vm640_vm0, %v856_v48, %v819_v47  ;;  %v858_v15 = vrot.slane %v819_v47, 4  ;;  %v851_v12 = vsel %vm640_vm0, %v831_v32, %v850_v54 }
 0x1de   : > { %v868_v58 = vpack.c.bf16 %v857_v57, %v857_v57  ;;  %v855_v59 = vsel %vm640_vm0, %v835_v51, %v854_v53  ;;  %v862_v4 = vrot.slane %v823_v62, 4  ;;  %v847_v13 = vperm.slane %v839_v3, %v3373_v63 }
 0x1df   : > { %2723 = vmatmul.msk.bf16.vlgmr.msra.gmra.mxu3 %vm1669_vm1, %v864_v55  ;;  %v867_v61 = vpack.c.bf16 %v855_v59, %v855_v59  ;;  %v859_v27 = vsel %vm640_vm0, %v843_v37, %v858_v15  ;;  %v865_v5 = vpack.c.bf16 %v851_v12, %v851_v12  ;;  %v1818_v28 = vsel %vm1669_vm1, %v1813_v35, 0 }
 0x1e0   : > { %1731 = vmatpush.bf16.xpose.msra.mxu3 %v1722_v60  ;;  %2727 = vmatmul.msk.bf16.vlgmr.msrb.gmra.mxu2 %vm1669_vm1, %v868_v58  ;;  %v863_v44 = vsel %vm640_vm0, %v847_v13, %v862_v4  ;;  %v869_v6 = vpack.c.bf16 %v859_v27, %v859_v27  ;;  %v852_v19 = vrot.slane %v835_v51, 4  ;;  %v860_v49 = vrot.slane %v847_v13, 4 }
 0x1e1   : > { %2726 = vmatmul.msk.bf16.vlgmr.msrb.gmra.mxu0 %vm1669_vm1, %v867_v61  ;;  %v871_v18 = vpack.c.bf16 %v863_v44, %v863_v44  ;;  %v1314_v52 = vrot.slane %v3509_v36, 4  ;;  %v2935_v20 = vpop.permute.xlu2 %2934 }
 0x1e2   : > { %v853_v42 = vsel %vm640_vm0, %v852_v19, %v811_v46  ;;  %v861_v29 = vsel %vm640_vm0, %v860_v49, %v823_v62  ;;  %v2937_v22 = vunpack.i.h.bf16 %v2935_v20  ;;  %v2936_v23 = vunpack.i.l.bf16 %v2935_v20 }
 0x1e3   : > { %v866_v7 = vpack.c.bf16 %v853_v42, %v853_v42  ;;  %v870_v35 = vpack.c.bf16 %v861_v29, %v861_v29 }
 0x1e4   : > { %v1424_v31 = vrot.slane %v2937_v22, 4  ;;  %v1312_v32 = vrot.slane %v2936_v23, 4  ;;  %v1315_v34 = vsel %vm640_vm0, %v2936_v23, %v1314_v52 }
 0x1e5   : > { %v1323_v45 = vperm.slane %v1315_v34, %v3347_v25 }
 0x1e6   : > { %v1313_v40 = vsel %vm640_vm0, %v1312_v32, %v3509_v36  ;;  %v1425_v43 = vsel %vm640_vm0, %v1424_v31, %v3534_v39 }
 0x1e7   : > { %v1319_v51 = vperm.slane %v1313_v40, %v3347_v25  ;;  %v1429_v55 = vperm.slane %v1425_v43, %v3347_v25  ;;  %v1374_v59 = vrot.slane %v1323_v45, 4 }
 0x1e9   : > { %v2945_v36 = vpop.permute.xlu2 %2944  ;;  %v1362_v3 = vrot.slane %v1319_v51, 4  ;;  %v1450_v27 = vrot.slane %v1429_v55, 4 }
 0x1ea   : > { %v2947_v57 = vunpack.i.h.bf16 %v2945_v36  ;;  %v2946_v39 = vunpack.i.l.bf16 %v2945_v36 }
 0x1ec   : > { %v1430_v1 = vrot.slane %v2947_v57, 4  ;;  %v1324_v62 = vrot.slane %v2946_v39, 4 }
 0x1ed   : > { %v3642_v8 = vpop.permute.xlu0 %1294 }
 0x1ee   : > { %v1350_v50 = vrot.slane %v3642_v8, 4 }
 0x1ef   : > { %2724 = vmatmul.msk.bf16.vlgmr.msrb.gmra.mxu3 %vm1669_vm1, %v865_v5 }
 0x1f0   : > { %1827 = vmatpush.bf16.xpose.msrb.mxu3 %v1818_v28  ;;  %2728 = vmatmul.msk.bf16.vlgmr.msra.gmra.mxu2 %vm1669_vm1, %v869_v6 }
 0x1f1   : > { %2730 = vmatmul.msk.bf16.vlgmr.msra.gmra.mxu0 %vm1669_vm1, %v871_v18 }
 0x1f7   : > { %v2930_v38 = vpop.permute.xlu1 %2929 }
 0x1f8   : > { %v2931_v33 = vunpack.i.l.bf16 %v2930_v38  ;;  %v2932_v16 = vunpack.i.h.bf16 %v2930_v38  ;;  %v2950_v2 = vpop.permute.xlu0 %2949 }
 0x1f9   : > { %v2951_v30 = vunpack.i.l.bf16 %v2950_v2  ;;  %v2952_v53 = vunpack.i.h.bf16 %v2950_v2 }
 0x1fa   : > { %v1338_v11 = vrot.slane %v2931_v33, 4 }
 0x1fb   : > { %v1326_v48 = vrot.slane %v2951_v30, 4  ;;  %v1325_v44 = vsel %vm640_vm0, %v1324_v62, %v2951_v30  ;;  %v1431_v5 = vsel %vm640_vm0, %v1430_v1, %v2952_v53 }
 0x1fc   : > { %v1331_v28 = vperm.slane %v1325_v44, %v3347_v25  ;;  %v1435_v42 = vperm.slane %v1431_v5, %v3347_v25 }
 0x1fd   : > { %v1327_v54 = vsel %vm640_vm0, %v2946_v39, %v1326_v48 }
 0x1fe   : > { %v1335_v4 = vperm.slane %v1327_v54, %v3347_v25 }
 0x1ff   : > { %2725 = vmatmul.msk.bf16.vlgmr.msra.gmra.mxu3 %vm1669_vm1, %v866_v7  ;;  %v2940_v9 = vpop.permute.xlu1 %2939 }
 0x200   : > { %v2942_v10 = vunpack.i.h.bf16 %v2940_v9  ;;  %v2941_v24 = vunpack.i.l.bf16 %v2940_v9  ;;  %v1372_v18 = vrot.slane %v1335_v4, 4  ;;  %v1375_v19 = vsel %vm640_vm0, %v1335_v4, %v1374_v59 }
 0x201   : > { %v1383_v7 = vperm.slane %v1375_v19, %v3373_v63 }
 0x202   : > { %v1336_v14 = vrot.slane %v2941_v24, 4  ;;  %v1436_v17 = vrot.slane %v2942_v10, 4  ;;  %v1339_v21 = vsel %vm640_vm0, %v2941_v24, %v1338_v11  ;;  %v1373_v9 = vsel %vm640_vm0, %v1372_v18, %v1323_v45 }
 0x203   : > { %v1347_v41 = vperm.slane %v1339_v21, %v3347_v25  ;;  %v1448_v10 = vrot.slane %v1435_v42, 4  ;;  %v1379_v11 = vperm.slane %v1373_v9, %v3373_v63  ;;  %v1422_v23 = vrot.slane %v1383_v7, 4  ;;  %v1297_v21 = vpop.permute.xlu2 %1296 }
 0x204   : > { %v1337_v26 = vsel %vm640_vm0, %v1336_v14, %v2931_v33  ;;  %v1437_v37 = vsel %vm640_vm0, %v1436_v17, %v2932_v16  ;;  %v1360_v33 = vrot.slane %v1331_v28, 4  ;;  %v1451_v14 = vsel %vm640_vm0, %v1435_v42, %v1450_v27 }
 0x205   : > { %v3658_v46 = vperm.slane %v1337_v26, %v3347_v25  ;;  %v3661_v47 = vperm.slane %v1437_v37, %v3347_v25  ;;  %v1398_v56 = vrot.slane %v1347_v41, 4  ;;  %v1449_v17 = vsel %vm640_vm0, %v1448_v10, %v1429_v55 }
 0x206   : > { %v1361_v52 = vsel %vm640_vm0, %v1360_v33, %v1319_v51  ;;  %v3692_v26 = vperm.slane %v1449_v17, %v3373_v63  ;;  %v1418_v30 = vrot.slane %v1379_v11, 4 }
 0x207   : > { %v2955_v58 = vpop.permute.xlu1 %2954  ;;  %v1386_v60 = vrot.slane %v3658_v46, 4  ;;  %v1462_v61 = vrot.slane %v3661_v47, 4  ;;  %v1367_v20 = vperm.slane %v1361_v52, %v3373_v63 }
 0x208   : > { %v2956_v0 = vunpack.i.l.bf16 %v2955_v58  ;;  %v2957_v15 = vunpack.i.h.bf16 %v2955_v58  ;;  %v1474_v48 = vrot.slane %v3692_v26, 4 }
 0x209   : > { %v1410_v37 = vrot.slane %v1367_v20, 4 }
 0x20a   : > { %v1348_v12 = vrot.slane %v2956_v0, 4  ;;  %v1351_v13 = vsel %vm640_vm0, %v2956_v0, %v1350_v50  ;;  %v1442_v38 = vrot.slane %v2957_v15, 4 }
 0x20b   : > { %v1359_v6 = vperm.slane %v1351_v13, %v3347_v25 }
 0x20c   : > { %v1349_v49 = vsel %vm640_vm0, %v1348_v12, %v3642_v8  ;;  %v1459_v8 = vperm.slane %v1451_v14, %v3373_v63  ;;  %v1443_v53 = vsel %vm640_vm0, %v1442_v38, %v1297_v21 }
 0x20d   : > { %v1396_v29 = vrot.slane %v1359_v6, 4  ;;  %v1399_v16 = vsel %vm640_vm0, %v1359_v6, %v1398_v56  ;;  %v1355_v2 = vperm.slane %v1349_v49, %v3347_v25  ;;  %v1447_v54 = vperm.slane %v1443_v53, %v3347_v25 }
 0x20e   : > { %v1478_v40 = vrot.slane %v1459_v8, 4  ;;  %v1407_v51 = vperm.slane %v1399_v16, %v3373_v63 }
 0x20f   : > { %2729 = vmatmul.msk.bf16.vlgmr.msrb.gmra.mxu3 %vm1669_vm1, %v870_v35  ;;  %v1363_v35 = vsel %vm640_vm0, %v1331_v28, %v1362_v3  ;;  %v1384_v31 = vrot.slane %v1355_v2, 4  ;;  %v1387_v32 = vsel %vm640_vm0, %v1355_v2, %v1386_v60  ;;  %v1397_v34 = vsel %vm640_vm0, %v1396_v29, %v1347_v41 }
 0x210   : > { %v1371_v24 = vperm.slane %v1363_v35, %v3373_v63  ;;  %v1395_v43 = vperm.slane %v1387_v32, %v3373_v63  ;;  %v1403_v45 = vperm.slane %v1397_v34, %v3373_v63  ;;  %v1420_v39 = vrot.slane %v1407_v51, 4 }
 0x211   : > { %v1385_v50 = vsel %vm640_vm0, %v1384_v31, %v3658_v46  ;;  %v1423_v58 = vsel %vm640_vm0, %v1407_v51, %v1422_v23  ;;  %v1460_v5 = vrot.slane %v1447_v54, 4  ;;  %v1463_v6 = vsel %vm640_vm0, %v1447_v54, %v1462_v61 }
 0x212   : > { %v1414_v22 = vrot.slane %v1371_v24, 4  ;;  %v1391_v36 = vperm.slane %v1385_v50, %v3373_v63  ;;  %v1412_v55 = vrot.slane %v1395_v43, 4  ;;  %v1416_v56 = vrot.slane %v1403_v45, 4 }
 0x213   : > { %v1419_v57 = vsel %vm640_vm0, %v1403_v45, %v1418_v30  ;;  %v1516_v0 = vrot.slane %v1423_v58, 4  ;;  %v3712_v62 = vsel %vm640_vm0, %v1420_v39, %v1383_v7  ;;  %v1471_v18 = vperm.slane %v1463_v6, %v3373_v63 }
 0x214   : > { %v3705_v41 = vsel %vm640_vm0, %v1395_v43, %v1414_v22  ;;  %v1408_v60 = vrot.slane %v1391_v36, 4  ;;  %v1413_v46 = vsel %vm640_vm0, %v1412_v55, %v1371_v24  ;;  %v1518_v1 = vrot.slane %v1419_v57, 4 }
 0x215   : > { %v1492_v59 = vrot.slane %v3705_v41, 4  ;;  %v1411_v15 = vsel %vm640_vm0, %v1391_v36, %v1410_v37  ;;  %v3717_v3 = vsel %vm640_vm0, %v1416_v56, %v1379_v11  ;;  %v1504_v4 = vrot.slane %v3712_v62, 4 }
 0x216   : > { %v1519_v12 = vsel %vm640_vm0, %v1423_v58, %v1518_v1  ;;  %v1409_v13 = vsel %vm640_vm0, %v1408_v60, %v1367_v20  ;;  %v1480_v27 = vrot.slane %v1413_v46, 4  ;;  %v1494_v7 = vrot.slane %v1411_v15, 4 }
 0x217   : > { %v3723_v44 = vperm.slane %v1519_v12, %v3347_v25  ;;  %v1482_v28 = vrot.slane %v1409_v13, 4  ;;  %v1493_v42 = vsel %vm640_vm0, %v1492_v59, %v1411_v15  ;;  %v1461_v38 = vsel %vm640_vm0, %v1460_v5, %v3661_v47 }
 0x218   : > { %v1481_v19 = vsel %vm640_vm0, %v1480_v27, %v1409_v13  ;;  %v1499_v29 = vperm.slane %v1493_v42, %v3347_v25  ;;  %v1505_v33 = vsel %vm640_vm0, %v1504_v4, %v3717_v3  ;;  %v1467_v61 = vperm.slane %v1461_v38, %v3373_v63 }
 0x219   : > { %v1487_v49 = vperm.slane %v1481_v19, %v3347_v25  ;;  %v1476_v35 = vrot.slane %v1471_v18, 4  ;;  %v1479_v9 = vsel %vm640_vm0, %v1471_v18, %v1478_v40  ;;  %v1506_v10 = vrot.slane %v3717_v3, 4 }
 0x21a   : > { %v1604_v24 = vrot.slane %v1479_v9, 4  ;;  %v1511_v11 = vperm.slane %v1505_v33, %v3347_v25  ;;  %v1517_v14 = vsel %vm640_vm0, %v1516_v0, %v1419_v57  ;;  %v1528_v47 = vrot.slane %v1499_v29, 4 }
 0x21b   : > { %v1472_v16 = vrot.slane %v1467_v61, 4  ;;  %v1475_v52 = vsel %vm640_vm0, %v1467_v61, %v1474_v48  ;;  %v1477_v17 = vsel %vm640_vm0, %v1476_v35, %v1459_v8  ;;  %v1523_v2 = vperm.slane %v1517_v14, %v3347_v25 }
 0x21c   : > { %v1592_v20 = vrot.slane %v1477_v17, 4  ;;  %v1606_v22 = vrot.slane %v1475_v52, 4  ;;  %v1529_v23 = vsel %vm640_vm0, %v1528_v47, %v1487_v49  ;;  %v1530_v21 = vrot.slane %v1487_v49, 4 }
 0x21d   : > { %v1473_v30 = vsel %vm640_vm0, %v1472_v16, %v3692_v26  ;;  %v1535_v31 = vperm.slane %v1529_v23, %v3373_v63  ;;  %v1552_v32 = vrot.slane %v1523_v2, 4  ;;  %v1554_v34 = vrot.slane %v1511_v11, 4 }
 0x21e   : > { %v1607_v37 = vsel %vm640_vm0, %v1479_v9, %v1606_v22  ;;  %v1593_v40 = vsel %vm640_vm0, %v1592_v20, %v1473_v30  ;;  %v1594_v43 = vrot.slane %v1473_v30, 4  ;;  %v1605_v8 = vsel %vm640_vm0, %v1604_v24, %v1475_v52 }
 0x21f   : > { %v3753_v45 = vperm.slane %v1607_v37, %v3347_v25  ;;  %v1553_v48 = vsel %vm640_vm0, %v1552_v32, %v1511_v11  ;;  %v1578_v50 = vrot.slane %v1535_v31, 4  ;;  %v1599_v51 = vperm.slane %v1593_v40, %v3347_v25 }
 0x220   : > { %v1559_v26 = vperm.slane %v1553_v48, %v3373_v63  ;;  %v1611_v53 = vperm.slane %v1605_v8, %v3347_v25  ;;  %v1531_v36 = vsel %vm640_vm0, %v1499_v29, %v1530_v21  ;;  %v1555_v55 = vsel %vm640_vm0, %v1523_v2, %v1554_v34 }
 0x221   : > { %v1618_v56 = vrot.slane %v1599_v51, 4  ;;  %v3762_v57 = vperm.slane %v1531_v36, %v3373_v63  ;;  %v3765_v39 = vperm.slane %v1555_v55, %v3373_v63  ;;  %v1483_v58 = vsel %vm640_vm0, %v1413_v46, %v1482_v28 }
 0x222   : > { %v1576_v59 = vrot.slane %v1559_v26, 4  ;;  %v1616_v60 = vrot.slane %v1611_v53, 4  ;;  %v1491_v0 = vperm.slane %v1483_v58, %v3347_v25  ;;  %v1495_v1 = vsel %vm640_vm0, %v3705_v41, %v1494_v7 }
 0x223   : > { %v1580_v54 = vrot.slane %v3765_v39, 4  ;;  %v1619_v15 = vsel %vm640_vm0, %v1611_v53, %v1618_v56  ;;  %v1503_v3 = vperm.slane %v1495_v1, %v3347_v25  ;;  %v1507_v4 = vsel %vm640_vm0, %v3712_v62, %v1506_v10 }
 0x224   : > { %v1577_v12 = vsel %vm640_vm0, %v1576_v59, %v1535_v31  ;;  %v1617_v46 = vsel %vm640_vm0, %v1616_v60, %v1599_v51  ;;  %v1627_v13 = vperm.slane %v1619_v15, %v3373_v63  ;;  %v1515_v27 = vperm.slane %v1507_v4, %v3347_v25 }
 0x225   : > { %v1623_v5 = vperm.slane %v1617_v46, %v3373_v63  ;;  %v1648_v41 = vpack.c.bf16 %v1577_v12, %v1577_v12  ;;  %v1581_v6 = vsel %vm640_vm0, %v1580_v54, %v3762_v57  ;;  %v1540_v28 = vrot.slane %v1503_v3, 4 }
 0x226   : > { %v1652_v18 = vpack.c.bf16 %v1581_v6, %v1581_v6  ;;  %v1653_v19 = vpack.c.bf16 %v1627_v13, %v1627_v13  ;;  %v1564_v42 = vrot.slane %v3723_v44, 4  ;;  %v1595_v62 = vsel %vm640_vm0, %v1477_v17, %v1594_v43 }
 0x227   : > { %v1640_v7 = vrot.slane %v1623_v5, 4  ;;  %v1649_v38 = vpack.c.bf16 %v1623_v5, %v1623_v5  ;;  %v1940_v49 = vunpack.c.l.b16 %v1648_v41  ;;  %v1541_v29 = vsel %vm640_vm0, %v1540_v28, %v1491_v0 }
 0x228   : > { %v1989_v33 = vunpack.c.l.b16 %v1652_v18  ;;  %v1990_v61 = vunpack.c.l.b16 %v1653_v19  ;;  %v1547_v35 = vperm.slane %v1541_v29, %v3373_v63  ;;  %v1565_v9 = vsel %vm640_vm0, %v1564_v42, %v1515_v27 }
 0x229   : > { %v1941_v10 = vunpack.c.l.b16 %v1649_v38  ;;  %v1571_v24 = vperm.slane %v1565_v9, %v3373_v63  ;;  %v1603_v11 = vperm.slane %v1595_v62, %v3347_v25  ;;  %v1628_v14 = vrot.slane %v3753_v45, 4 }
 0x22a   : > { %v1991_v47 = vpack.c.b16 %v1990_v61, %v1989_v33  ;;  %v1579_v16 = vsel %vm640_vm0, %v1559_v26, %v1578_v50  ;;  %v1641_v52 = vsel %vm640_vm0, 0.0, %v1640_v7  ;;  %v1542_v17 = vrot.slane %v1491_v0, 4 }
 0x22b   : > { %v1942_v2 = vpack.c.b16 %v1941_v10, %v1940_v49  ;;  %v1584_v20 = vrot.slane %v1571_v24, 4  ;;  %v1629_v22 = vsel %vm640_vm0, %v1628_v14, %v1603_v11  ;;  %v1650_v23 = vpack.c.bf16 %v1579_v16, %v1579_v16 }
 0x22c   : > { %v1996_v21 = vsel %vm1946_vm2, %v1991_v47, 0  ;;  %v1635_v30 = vperm.slane %v1629_v22, %v3373_v63  ;;  %v1651_v31 = vpack.c.bf16 %v1641_v52, %v1641_v52  ;;  %v1543_v32 = vsel %vm640_vm0, %v1503_v3, %v1542_v17 }
 0x22d   : > { %v1948_v34 = vsel %vm1946_vm2, %v1942_v2, 0  ;;  %2005 = vmatpush.bf16.msra.mxu3 %v1996_v21  ;;  %v1585_v37 = vsel %vm640_vm0, %v1584_v20, %v1547_v35  ;;  %v1965_v40 = vunpack.c.l.b16 %v1650_v23  ;;  %v1551_v43 = vperm.slane %v1543_v32, %v3373_v63 }
 0x22e   : > { %1957 = vmatpush.bf16.msrb.mxu1 %v1948_v34  ;;  %v1656_v8 = vpack.c.bf16 %v1585_v37, %v1585_v37  ;;  %v1657_v48 = vpack.c.bf16 %v1635_v30, %v1635_v30  ;;  %v1966_v50 = vunpack.c.l.b16 %v1651_v31  ;;  %v1566_v51 = vrot.slane %v1515_v27, 4 }
 0x22f   : > { %v1630_v26 = vrot.slane %v1603_v11, 4  ;;  %v1582_v53 = vrot.slane %v3762_v57, 4  ;;  %v1642_v36 = vrot.slane %v1627_v13, 4  ;;  %v1586_v55 = vrot.slane %v1547_v35, 4 }
 0x230   : > { %v2037_v56 = vunpack.c.l.b16 %v1656_v8  ;;  %v2038_v58 = vunpack.c.l.b16 %v1657_v48  ;;  %v1967_v59 = vpack.c.b16 %v1966_v50, %v1965_v40  ;;  %v1567_v60 = vsel %vm640_vm0, %v3723_v44, %v1566_v51 }
 0x231   : > { %v1575_v0 = vperm.slane %v1567_v60, %v3373_v63  ;;  %v1631_v1 = vsel %vm640_vm0, %v3753_v45, %v1630_v26  ;;  %v1583_v54 = vsel %vm640_vm0, %v3765_v39, %v1582_v53  ;;  %v1643_v15 = vsel %vm640_vm0, 0.0, %v1642_v36 }
 0x232   : > { %v2039_v3 = vpack.c.b16 %v2038_v58, %v2037_v56  ;;  %v1972_v57 = vsel %vm1946_vm2, %v1967_v59, 0  ;;  %v1639_v4 = vperm.slane %v1631_v1, %v3373_v63  ;;  %v1654_v12 = vpack.c.bf16 %v1583_v54, %v1583_v54 }
 0x233   : > { %1981 = vmatpush.bf16.msrb.mxu2 %v1972_v57  ;;  %v1588_v46 = vrot.slane %v1575_v0, 4  ;;  %v1655_v13 = vpack.c.bf16 %v1643_v15, %v1643_v15  ;;  %v1587_v44 = vsel %vm640_vm0, %v1571_v24, %v1586_v55  ;;  %v1644_v27 = vrot.slane %v1635_v30, 4 }
 0x234   : > { %v2044_v5 = vsel %vm1946_vm2, %v2039_v3, 0  ;;  %v1661_v45 = vpack.c.bf16 %v1639_v4, %v1639_v4  ;;  %v2013_v41 = vunpack.c.l.b16 %v1654_v12  ;;  %v1658_v6 = vpack.c.bf16 %v1587_v44, %v1587_v44 }
 0x235   : > { %2053 = vmatpush.bf16.msra.mxu1 %v2044_v5  ;;  %v1589_v39 = vsel %vm640_vm0, %v1588_v46, %v1551_v43  ;;  %v2014_v28 = vunpack.c.l.b16 %v1655_v13  ;;  %v1645_v18 = vsel %vm640_vm0, 0.0, %v1644_v27  ;;  %v1590_v19 = vrot.slane %v1551_v43, 4 }
 0x236   : > { %v1660_v42 = vpack.c.bf16 %v1589_v39, %v1589_v39  ;;  %v2086_v62 = vunpack.c.l.b16 %v1661_v45  ;;  %v1659_v7 = vpack.c.bf16 %v1645_v18, %v1645_v18  ;;  %v2061_v38 = vunpack.c.l.b16 %v1658_v6 }
 0x237   : > { %v2015_v49 = vpack.c.b16 %v2014_v28, %v2013_v41  ;;  %v1591_v29 = vsel %vm640_vm0, %v1575_v0, %v1590_v19  ;;  %v1646_v33 = vrot.slane %v1639_v4, 4 }
 0x238   : > { %v2085_v61 = vunpack.c.l.b16 %v1660_v42  ;;  %v2062_v35 = vunpack.c.l.b16 %v1659_v7  ;;  %v1662_v9 = vpack.c.bf16 %v1591_v29, %v1591_v29 }
 0x239   : > { %v2020_v10 = vsel %vm1946_vm2, %v2015_v49, 0  ;;  %v1647_v24 = vsel %vm640_vm0, 0.0, %v1646_v33 }
 0x23a   : > { %v2087_v11 = vpack.c.b16 %v2086_v62, %v2085_v61  ;;  %2029 = vmatpush.bf16.msrb.mxu0 %v2020_v10  ;;  %v2063_v14 = vpack.c.b16 %v2062_v35, %v2061_v38  ;;  %v1663_v47 = vpack.c.bf16 %v1647_v24, %v1647_v24  ;;  %v2109_v16 = vunpack.c.l.b16 %v1662_v9 }
 0x23c   : > { %v2092_v52 = vsel %vm1946_vm2, %v2087_v11, 0  ;;  %v2068_v17 = vsel %vm1946_vm2, %v2063_v14, 0  ;;  %v2110_v2 = vunpack.c.l.b16 %v1663_v47 }
 0x23d   : > { %2101 = vmatpush.bf16.msrb.mxu3 %v2092_v52  ;;  %2077 = vmatpush.bf16.msra.mxu2 %v2068_v17 }
 0x23e   : > { %v2111_v20 = vpack.c.b16 %v2110_v2, %v2109_v16 }
 0x240   : > { %v2116_v22 = vsel %vm1946_vm2, %v2111_v20, 0 }
 0x241   : > { %2125 = vmatpush.bf16.msra.mxu0 %v2116_v22 }
 0x25e   : > { %v1757_v23 = vpop.f32.mrf.mxu0 }
 0x25f   : > { %v1867_v40 = vsel %vm1857_vm3, %v1757_v23, -inf }
 0x262   : > { %v1685_v21 = vpop.f32.mrf.mxu3 }
 0x263   : > { %v1781_v30 = vpop.f32.mrf.mxu2  ;;  %v1858_v31 = vsel %vm1857_vm3, %v1685_v21, -inf }
 0x264   : > { %1859 = vmax.xlane.f32.xlu2 %v1858_v31  ;;  %v1870_v51 = vsel %vm1857_vm3, %v1781_v30, -inf }
 0x266   : > { %v1759_v32 = vpop.f32.mrf.mxu0 }
 0x26a   : > { %v1687_v34 = vpop.f32.mrf.mxu3 }
 0x26b   : > { %v1783_v37 = vpop.f32.mrf.mxu2 }
 0x26c   : > { %1868 = vmax.xlane.f32.xlu2 %v1867_v40 }
 0x26e   : > { %v3823_v43 = vpop.f32.mrf.mxu0 }
 0x26f   : > { %v1879_v54 = vsel %vm1857_vm3, %v3823_v43, -inf }
 0x272   : > { %v1709_v8 = vpop.f32.mrf.mxu3 }
 0x273   : > { %v1805_v48 = vpop.f32.mrf.mxu2  ;;  %v1861_v50 = vsel %vm1857_vm3, %v1709_v8, -inf }
 0x274   : > { %1862 = vmax.xlane.f32.xlu1 %v1861_v50  ;;  %1871 = vmax.xlane.f32.xlu2 %v1870_v51  ;;  %v1873_v55 = vsel %vm1857_vm3, %v1805_v48, -inf }
 0x276   : > { %v1855_v26 = vpop.f32.mrf.mxu0 }
 0x27a   : > { %v1711_v53 = vpop.f32.mrf.mxu3 }
 0x27b   : > { %v1807_v36 = vpop.f32.mrf.mxu2 }
 0x27c   : > { %1874 = vmax.xlane.f32.xlu1 %v1873_v55 }
 0x282   : > { %v1733_v56 = vpop.f32.mrf.mxu3 }
 0x283   : > { %v1864_v58 = vsel %vm1857_vm3, %v1733_v56, -inf }
 0x284   : > { %1865 = vmax.xlane.f32.xlu0 %v1864_v58 }
 0x28a   : > { %v1735_v59 = vpop.f32.mrf.mxu3 }
 0x292   : > { %v1829_v60 = vpop.f32.mrf.mxu3 }
 0x293   : > { %v1876_v0 = vsel %vm1857_vm3, %v1829_v60, -inf }
 0x294   : > { %1877 = vmax.xlane.f32.xlu0 %v1876_v0 }
 0x29a   : > { %v1831_v1 = vpop.f32.mrf.mxu3 }
 0x29c   : > { %1880 = vmax.xlane.f32.xlu0 %v1879_v54 }
 0x2d7   : > { %v1860_v15 = vpop.xlane.xlu2 %1859 }
 0x2d8   : > { %v1882_v3 = vsub.f32 %v1685_v21, %v1860_v15 }
 0x2da   : > { %v1890_v57 = vmul.f32 1.442695, %v1882_v3 }
 0x2dc   : > { %2959 = vpow2.f32 %v1890_v57 }
 0x2df   : > { %v1869_v4 = vpop.xlane.xlu2 %1868 }
 0x2e0   : > { %v1885_v12 = vsub.f32 %v1757_v23, %v1869_v4 }
 0x2e2   : > { %v2960_v46 = vpop.eup %2959  ;;  %v1896_v13 = vmul.f32 1.442695, %v1885_v12 }
 0x2e3   : > { %v1906_v44 = vsel %vm1857_vm3, %v2960_v46, 0.0  ;;  %v1930_v27 = vpack.c.bf16 %v2960_v46, %v2960_v46 }
 0x2e4   : > { %2961 = vpow2.f32 %v1896_v13  ;;  %1907 = vadd.xlane.f32.xlu0 %v1906_v44 }
 0x2e5   : > { %2731 = vmatmul.msk.bf16.vlgmr.msrb.gmra.mxu1 %vm1857_vm3, %v1930_v27 }
 0x2e7   : > { %v1863_v5 = vpop.xlane.xlu1 %1862  ;;  %v1872_v45 = vpop.xlane.xlu2 %1871 }
 0x2e8   : > { %v1883_v41 = vsub.f32 %v1709_v8, %v1863_v5  ;;  %v1886_v6 = vsub.f32 %v1781_v30, %v1872_v45 }
 0x2ea   : > { %v2962_v39 = vpop.eup %2961  ;;  %v1892_v28 = vmul.f32 1.442695, %v1883_v41  ;;  %v1898_v18 = vmul.f32 1.442695, %v1886_v6 }
 0x2eb   : > { %v1933_v19 = vpack.c.bf16 %v2962_v39, %v2962_v39  ;;  %v1915_v42 = vsel %vm1857_vm3, %v2962_v39, 0.0 }
 0x2ec   : > { %2963 = vpow2.f32 %v1892_v28  ;;  %1916 = vadd.xlane.f32.xlu1 %v1915_v42 }
 0x2ed   : > { %2965 = vpow2.f32 %v1898_v18  ;;  %2734 = vmatmul.msk.bf16.vlgmr.msrb.gmra.mxu0 %vm1857_vm3, %v1933_v19 }
 0x2ef   : > { %v1875_v62 = vpop.xlane.xlu1 %1874 }
 0x2f0   : > { %v1887_v38 = vsub.f32 %v1805_v48, %v1875_v62 }
 0x2f2   : > { %v2964_v7 = vpop.eup %2963  ;;  %v1900_v9 = vmul.f32 1.442695, %v1887_v38 }
 0x2f3   : > { %v2966_v49 = vpop.eup %2965  ;;  %v1931_v29 = vpack.c.bf16 %v2964_v7, %v2964_v7  ;;  %v1909_v33 = vsel %vm1857_vm3, %v2964_v7, 0.0 }
 0x2f4   : > { %v1934_v61 = vpack.c.bf16 %v2966_v49, %v2966_v49  ;;  %v1918_v35 = vsel %vm1857_vm3, %v2966_v49, 0.0  ;;  %1910 = vadd.xlane.f32.xlu0 %v1909_v33  ;;  %2967 = vpow2.f32 %v1900_v9 }
 0x2f5   : > { %1919 = vadd.xlane.f32.xlu2 %v1918_v35  ;;  %2732 = vmatmul.msk.bf16.vlgmr.msrb.gmra.mxu2 %vm1857_vm3, %v1931_v29 }
 0x2f6   : > { %2735 = vmatmul.msk.bf16.vlgmr.msra.gmra.mxu1 %vm1857_vm3, %v1934_v61 }
 0x2f7   : > { %v1866_v10 = vpop.xlane.xlu0 %1865 }
 0x2f8   : > { %v1884_v24 = vsub.f32 %v1733_v56, %v1866_v10 }
 0x2fa   : > { %v1894_v11 = vmul.f32 1.442695, %v1884_v24  ;;  %v2968_v14 = vpop.eup %2967 }
 0x2fb   : > { %v1935_v16 = vpack.c.bf16 %v2968_v14, %v2968_v14  ;;  %v1921_v23 = vsel %vm1857_vm3, %v2968_v14, 0.0 }
 0x2fc   : > { %2969 = vpow2.f32 %v1894_v11 }
 0x302   : > { %v2970_v47 = vpop.eup %2969 }
 0x303   : > { %v1932_v52 = vpack.c.bf16 %v2970_v47, %v2970_v47  ;;  %v1912_v17 = vsel %vm1857_vm3, %v2970_v47, 0.0 }
 0x304   : > { %1913 = vadd.xlane.f32.xlu1 %v1912_v17 }
 0x305   : > { %2733 = vmatmul.msk.bf16.vlgmr.msra.gmra.mxu3 %vm1857_vm3, %v1932_v52  ;;  %2736 = vmatmul.msk.bf16.vlgmr.msra.gmra.mxu2 %vm1857_vm3, %v1935_v16 }
 0x307   : > { %v1878_v2 = vpop.xlane.xlu0 %1877 }
 0x308   : > { %v1888_v20 = vsub.f32 %v1829_v60, %v1878_v2 }
 0x30a   : > { %v1902_v22 = vmul.f32 1.442695, %v1888_v20 }
 0x30c   : > { %2971 = vpow2.f32 %v1902_v22  ;;  %1922 = vadd.xlane.f32.xlu1 %v1921_v23 }
 0x30f   : > { %v1881_v21 = vpop.xlane.xlu0 %1880 }
 0x310   : > { %v1889_v30 = vsub.f32 %v3823_v43, %v1881_v21 }
 0x312   : > { %v2972_v31 = vpop.eup %2971  ;;  %v1904_v32 = vmul.f32 1.442695, %v1889_v30 }
 0x313   : > { %v1936_v34 = vpack.c.bf16 %v2972_v31, %v2972_v31  ;;  %v1924_v37 = vsel %vm1857_vm3, %v2972_v31, 0.0 }
 0x314   : > { %2973 = vpow2.f32 %v1904_v32  ;;  %1925 = vadd.xlane.f32.xlu2 %v1924_v37 }
 0x315   : > { %2737 = vmatmul.msk.bf16.vlgmr.msrb.gmra.mxu3 %vm1857_vm3, %v1936_v34 }
 0x31a   : > { %v2974_v40 = vpop.eup %2973 }
 0x31b   : > { %v1937_v8 = vpack.c.bf16 %v2974_v40, %v2974_v40  ;;  %v1927_v48 = vsel %vm1857_vm3, %v2974_v40, 0.0 }
 0x31c   : > { %1928 = vadd.xlane.f32.xlu2 %v1927_v48 }
 0x31d   : > { %2738 = vmatmul.msk.bf16.vlgmr.msra.gmra.mxu0 %vm1857_vm3, %v1937_v8 }
 0x357   : > { %v1908_v55 = vpop.xlane.xlu0 %1907 }
 0x358   : > { %2975 = vrcp.f32 %v1908_v55 }
 0x35e   : > { %v2976_v54 = vpop.eup %2975 }
 0x35f   : > { %v1917_v36 = vpop.xlane.xlu1 %1916 }
 0x362   : > { %v1959_v50 = vpop.f32.mrf.mxu1 }
 0x363   : > { %v2139_v46 = vmul.f32 %v2976_v54, %v1959_v50 }
 0x365   : > { %v2149_v45 = vrot.slane %v2139_v46, 4 }
 0x367   : > { %v1911_v0 = vpop.xlane.xlu0 %1910 }
 0x368   : > { %v1920_v59 = vpop.xlane.xlu2 %1919 }
 0x36a   : > { %v1961_v51 = vpop.f32.mrf.mxu1  ;;  %v2031_v26 = vpop.f32.mrf.mxu0 }
 0x372   : > { %v2033_v43 = vpop.f32.mrf.mxu0 }
 0x373   : > { %v2055_v53 = vpop.f32.mrf.mxu1 }
 0x377   : > { %v1914_v60 = vpop.xlane.xlu1 %1913 }
 0x378   : > { %v1983_v56 = vpop.f32.mrf.mxu2  ;;  %2977 = vrcp.f32 %v1914_v60 }
 0x379   : > { %2979 = vrcp.f32 %v1911_v0 }
 0x37a   : > { %2981 = vrcp.f32 %v1917_v36 }
 0x37b   : > { %v2057_v58 = vpop.f32.mrf.mxu1  ;;  %2983 = vrcp.f32 %v1920_v59 }
 0x37e   : > { %v2978_v3 = vpop.eup %2977 }
 0x37f   : > { %v2980_v12 = vpop.eup %2979  ;;  %v1923_v5 = vpop.xlane.xlu1 %1922 }
 0x380   : > { %v1985_v1 = vpop.f32.mrf.mxu2  ;;  %v2140_v44 = vmul.f32 %v2980_v12, %v1983_v56  ;;  %v2982_v27 = vpop.eup %2981  ;;  %2985 = vrcp.f32 %v1923_v5 }
 0x381   : > { %v2142_v41 = vmul.f32 %v2982_v27, %v2031_v26  ;;  %v2984_v33 = vpop.eup %2983 }
 0x382   : > { %v2161_v39 = vrot.slane %v2140_v44, 4  ;;  %v2143_v9 = vmul.f32 %v2984_v33, %v2055_v53 }
 0x383   : > { %v2159_v42 = vrot.slane %v2142_v41, 4 }
 0x384   : > { %v2162_v38 = vsel %vm640_vm0, %v2142_v41, %v2161_v39  ;;  %v2173_v17 = vrot.slane %v2143_v9, 4 }
 0x385   : > { %v2160_v29 = vsel %vm640_vm0, %v2159_v42, %v2140_v44  ;;  %v2170_v10 = vperm.slane %v2162_v38, %v3347_v25 }
 0x386   : > { %v2986_v35 = vpop.eup %2985  ;;  %v2166_v24 = vperm.slane %v2160_v29, %v3347_v25 }
 0x387   : > { %v1926_v15 = vpop.xlane.xlu2 %1925  ;;  %v2207_v2 = vrot.slane %v2170_v10, 4 }
 0x388   : > { %v2007_v57 = vpop.f32.mrf.mxu3  ;;  %v2079_v4 = vpop.f32.mrf.mxu2  ;;  %2987 = vrcp.f32 %v1926_v15  ;;  %v2195_v23 = vrot.slane %v2166_v24, 4 }
 0x389   : > { %v2141_v13 = vmul.f32 %v2978_v3, %v2007_v57  ;;  %v2144_v14 = vmul.f32 %v2986_v35, %v2079_v4 }
 0x38b   : > { %v2147_v6 = vrot.slane %v2141_v13, 4  ;;  %v2150_v28 = vsel %vm640_vm0, %v2141_v13, %v2149_v45  ;;  %v2185_v30 = vrot.slane %v2144_v14, 4 }
 0x38c   : > { %v2158_v49 = vperm.slane %v2150_v28, %v3347_v25 }
 0x38d   : > { %v2148_v62 = vsel %vm640_vm0, %v2147_v6, %v2139_v46 }
 0x38e   : > { %v2154_v61 = vperm.slane %v2148_v62, %v3347_v25  ;;  %v2209_v11 = vrot.slane %v2158_v49, 4  ;;  %v2988_v47 = vpop.eup %2987  ;;  %v2208_v32 = vsel %vm640_vm0, %v2207_v2, %v2158_v49 }
 0x38f   : > { %v1929_v7 = vpop.xlane.xlu2 %1928  ;;  %v2214_v36 = vperm.slane %v2208_v32, %v3373_v63 }
 0x390   : > { %v2009_v18 = vpop.f32.mrf.mxu3  ;;  %v2081_v19 = vpop.f32.mrf.mxu2  ;;  %2989 = vrcp.f32 %v1929_v7  ;;  %v2197_v16 = vrot.slane %v2154_v61, 4  ;;  %v2210_v21 = vsel %vm640_vm0, %v2170_v10, %v2209_v11  ;;  %v2196_v8 = vsel %vm640_vm0, %v2195_v23, %v2154_v61 }
 0x391   : > { %v2218_v51 = vperm.slane %v2210_v21, %v3373_v63  ;;  %v2202_v59 = vperm.slane %v2196_v8, %v3373_v63  ;;  %v2253_v46 = vrot.slane %v2214_v36, 4 }
 0x392   : > { %v2198_v48 = vsel %vm640_vm0, %v2166_v24, %v2197_v16 }
 0x393   : > { %v2206_v60 = vperm.slane %v2198_v48, %v3373_v63  ;;  %v2257_v4 = vrot.slane %v2218_v51, 4  ;;  %v2245_v28 = vrot.slane %v2202_v59, 4 }
 0x395   : > { %v2249_v18 = vrot.slane %v2206_v60, 4 }
 0x396   : > { %v2990_v22 = vpop.eup %2989 }
 0x398   : > { %v2103_v52 = vpop.f32.mrf.mxu3 }
 0x399   : > { %v2145_v20 = vmul.f32 %v2988_v47, %v2103_v52 }
 0x39a   : > { %v2127_v31 = vpop.f32.mrf.mxu0 }
 0x39b   : > { %v2171_v34 = vrot.slane %v2145_v20, 4  ;;  %v2174_v37 = vsel %vm640_vm0, %v2145_v20, %v2173_v17  ;;  %v2146_v40 = vmul.f32 %v2990_v22, %v2127_v31 }
 0x39c   : > { %v2182_v50 = vperm.slane %v2174_v37, %v3347_v25 }
 0x39d   : > { %v2172_v26 = vsel %vm640_vm0, %v2171_v34, %v2143_v9  ;;  %v2183_v43 = vrot.slane %v2146_v40, 4  ;;  %v2186_v53 = vsel %vm640_vm0, %v2146_v40, %v2185_v30 }
 0x39e   : > { %v2178_v55 = vperm.slane %v2172_v26, %v3347_v25  ;;  %v2233_v56 = vrot.slane %v2182_v50, 4  ;;  %v2194_v58 = vperm.slane %v2186_v53, %v3347_v25 }
 0x39f   : > { %v2184_v0 = vsel %vm640_vm0, %v2183_v43, %v2144_v14 }
 0x3a0   : > { %v2221_v1 = vrot.slane %v2178_v55, 4  ;;  %v2190_v54 = vperm.slane %v2184_v0, %v3347_v25  ;;  %v2231_v15 = vrot.slane %v2194_v58, 4  ;;  %v2234_v3 = vsel %vm640_vm0, %v2194_v58, %v2233_v56  ;;  %v2105_v57 = vpop.f32.mrf.mxu3 }
 0x3a1   : > { %v2242_v12 = vperm.slane %v2234_v3, %v3373_v63 }
 0x3a2   : > { %v2219_v13 = vrot.slane %v2190_v54, 4  ;;  %v2222_v44 = vsel %vm640_vm0, %v2190_v54, %v2221_v1  ;;  %v2232_v27 = vsel %vm640_vm0, %v2231_v15, %v2182_v50  ;;  %v2129_v5 = vpop.f32.mrf.mxu0 }
 0x3a3   : > { %v2230_v45 = vperm.slane %v2222_v44, %v3373_v63  ;;  %v2238_v41 = vperm.slane %v2232_v27, %v3373_v63  ;;  %v2255_v6 = vrot.slane %v2242_v12, 4  ;;  %v2258_v39 = vsel %vm640_vm0, %v2242_v12, %v2257_v4 }
 0x3a4   : > { %v2220_v19 = vsel %vm640_vm0, %v2219_v13, %v2178_v55  ;;  %v2295_v42 = vrot.slane %v2258_v39, 4 }
 0x3a5   : > { %v2226_v62 = vperm.slane %v2220_v19, %v3373_v63  ;;  %v2247_v7 = vrot.slane %v2230_v45, 4  ;;  %v2251_v38 = vrot.slane %v2238_v41, 4  ;;  %v2254_v49 = vsel %vm640_vm0, %v2238_v41, %v2253_v46 }
 0x3a6   : > { %v2297_v29 = vrot.slane %v2254_v49, 4  ;;  %v2250_v33 = vsel %vm640_vm0, %v2230_v45, %v2249_v18  ;;  %v2256_v61 = vsel %vm640_vm0, %v2255_v6, %v2218_v51  ;;  %v2296_v35 = vsel %vm640_vm0, %v2295_v42, %v2254_v49 }
 0x3a7   : > { %v2243_v9 = vrot.slane %v2226_v62, 4  ;;  %v2246_v10 = vsel %vm640_vm0, %v2226_v62, %v2245_v28  ;;  %v2252_v24 = vsel %vm640_vm0, %v2251_v38, %v2214_v36  ;;  %v2248_v11 = vsel %vm640_vm0, %v2247_v7, %v2206_v60 }
 0x3a8   : > { %v2259_v14 = vrot.slane %v2248_v11, 4  ;;  %v2273_v47 = vrot.slane %v2246_v10, 4  ;;  %v2283_v16 = vrot.slane %v2256_v61, 4  ;;  %v2285_v52 = vrot.slane %v2252_v24, 4 }
 0x3a9   : > { %v2244_v17 = vsel %vm640_vm0, %v2243_v9, %v2202_v59  ;;  %v2298_v2 = vsel %vm640_vm0, %v2258_v39, %v2297_v29  ;;  %v2271_v20 = vrot.slane %v2250_v33, 4  ;;  %v2302_v22 = vperm.slane %v2296_v35, %v3347_v25 }
 0x3aa   : > { %v2261_v23 = vrot.slane %v2244_v17, 4  ;;  %v2274_v21 = vsel %vm640_vm0, %v2250_v33, %v2273_v47  ;;  %v2286_v30 = vsel %vm640_vm0, %v2256_v61, %v2285_v52  ;;  %v2306_v31 = vperm.slane %v2298_v2, %v3347_v25  ;;  %v2804_v47 = vld [vmem:[#allocation7 + $0x20] sm:$0xff]  ;;  %v2802_v52 = vld [vmem:[#allocation7 + $0x10] sm:$0xff] }
 0x3ab   : > { %v2282_v32 = vperm.slane %v2274_v21, %v3347_v25  ;;  %v2294_v34 = vperm.slane %v2286_v30, %v3347_v25  ;;  %v2260_v37 = vsel %vm640_vm0, %v2259_v14, %v2244_v17  ;;  %v2272_v40 = vsel %vm640_vm0, %v2271_v20, %v2246_v10  ;;  %v2806_v14 = vld [vmem:[#allocation7 + $0x30] sm:$0xff]  ;;  %v2801_v17 = vld [vmem:[#allocation7 + $0x8] sm:$0xff]  ;;  %v2800_v2 = vld [vmem:[#allocation7] sm:$0xff] }
 0x3ac   : > { %v2262_v8 = vsel %vm640_vm0, %v2248_v11, %v2261_v23  ;;  %v2343_v48 = vrot.slane %v2306_v31, 4  ;;  %v2266_v50 = vperm.slane %v2260_v37, %v3347_v25  ;;  %v2278_v51 = vperm.slane %v2272_v40, %v3347_v25  ;;  %v2807_v11 = vld [vmem:[#allocation7 + $0x38] sm:$0xff] }
 0x3ad   : > { %v2270_v26 = vperm.slane %v2262_v8, %v3347_v25  ;;  %v2319_v43 = vrot.slane %v2282_v32, 4  ;;  %v2284_v53 = vsel %vm640_vm0, %v2283_v16, %v2252_v24  ;;  %v2331_v36 = vrot.slane %v2302_v22, 4  ;;  %2481 = vmatpush.bf16.msrb.mxu1 %v2807_v11  ;;  %v2803_v16 = vld [vmem:[#allocation7 + $0x18] sm:$0xff] }
 0x3ae   : > { %v2344_v55 = vsel %vm640_vm0, %v2343_v48, %v2294_v34  ;;  %v2290_v56 = vperm.slane %v2284_v53, %v3347_v25  ;;  %v2309_v58 = vrot.slane %v2266_v50, 4  ;;  %v2307_v59 = vrot.slane %v2278_v51, 4 }
 0x3af   : > { %v2320_v60 = vsel %vm640_vm0, %v2319_v43, %v2270_v26  ;;  %v2350_v0 = vperm.slane %v2344_v55, %v3373_v63  ;;  %v2321_v1 = vrot.slane %v2270_v26, 4  ;;  %v2345_v39 = vrot.slane %v2294_v34, 4  ;;  %v2958_v43 = vld [vmem:[%s3977_s5] ss:$0 sm:$0xff] }
 0x3b0   : > { %v2326_v54 = vperm.slane %v2320_v60, %v3373_v63  ;;  %v2310_v15 = vsel %vm640_vm0, %v2278_v51, %v2309_v58  ;;  %v2333_v3 = vrot.slane %v2290_v56, 4  ;;  %v2308_v57 = vsel %vm640_vm0, %v2307_v59, %v2266_v50 }
 0x3b1   : > { %v2363_v4 = vrot.slane %v2350_v0, 4  ;;  %v2318_v12 = vperm.slane %v2310_v15, %v3373_v63  ;;  %v2332_v46 = vsel %vm640_vm0, %v2331_v36, %v2290_v56  ;;  %v2314_v13 = vperm.slane %v2308_v57, %v3373_v63  ;;  %2482 = vmatpush.bf16.msrb.mxu1 %v2806_v14 }
 0x3b2   : > { %v2334_v25 = vsel %vm640_vm0, %v2302_v22, %v2333_v3  ;;  %v2338_v44 = vperm.slane %v2332_v46, %v3373_v63  ;;  %v2322_v27 = vsel %vm640_vm0, %v2282_v32, %v2321_v1  ;;  %v2346_v38 = vsel %vm640_vm0, %v2306_v31, %v2345_v39 }
 0x3b3   : > { %v2364_v5 = vsel %vm640_vm0, %v2363_v4, %v2326_v54  ;;  %v2342_v45 = vperm.slane %v2334_v25, %v3373_v63  ;;  %v2361_v41 = vrot.slane %v2318_v12, 4  ;;  %v2330_v19 = vperm.slane %v2322_v27, %v3373_v63 }
 0x3b4   : > { %2384 = vrot.lane.b32.xlu0 %v2364_v5, %s3163_s23  ;;  %v2355_v6 = vrot.slane %v2338_v44, 4  ;;  %v2357_v7 = vrot.slane %v2314_v13, 4  ;;  %v2365_v29 = vrot.slane %v2326_v54, 4  ;;  %v2354_v61 = vperm.slane %v2346_v38, %v3373_v63  ;;  %v2805_v63 = vld [vmem:[#allocation7 + $0x28] sm:$0xff] }
 0x3b5   : > { %v2359_v28 = vrot.slane %v2342_v45, 4  ;;  %v2362_v18 = vsel %vm640_vm0, %v2342_v45, %v2361_v41  ;;  %v2369_v49 = vrot.slane %v2330_v19, 4  ;;  %2483 = vmatpush.bf16.msrb.mxu1 %v2805_v63 }
 0x3b6   : > { %2380 = vrot.lane.b32.xlu2 %v2362_v18, %s3164_s25  ;;  %v2356_v42 = vsel %vm640_vm0, %v2355_v6, %v2314_v13  ;;  %v2358_v33 = vsel %vm640_vm0, %v2338_v44, %v2357_v7  ;;  %v2366_v9 = vsel %vm640_vm0, %v2350_v0, %v2365_v29  ;;  %v2367_v10 = vrot.slane %v2354_v61, 4  ;;  %s2506_s25 = scalar_lea.hbm %s3981_s9, %s2772_s16 }
 0x3b7   : > { %v2360_v62 = vsel %vm640_vm0, %v2359_v28, %v2318_v12  ;;  %v2370_v35 = vsel %vm640_vm0, %v2354_v61, %v2369_v49  ;;  %s2510_s11 = sshll.u32 %s2506_s25, 4  ;;  %s2511_s11 = int_to_ptr.hbm [resolvable:$true] %s2510_s11 }
 0x3b8   : > { %2376 = vrot.lane.b32.xlu1 %v2360_v62, %s3167_s2  ;;  %v2368_v24 = vsel %vm640_vm0, %v2367_v10, %v2330_v19  ;;  %s388_s2 = scalar_lea.vmem [#allocation8], %s2623_s17  ;;  %s3095_s13 = sshra.s32 %s2511_s11, 4  ;;  %s3096_s13 = int_to_ptr.hbm [resolvable:$true] %s3095_s13 }
 0x3b9   : > { %2484 = vmatpush.bf16.msrb.mxu1 %v2804_v47  ;;  %s3097_s21 = scalar_lea.hbm %s3096_s13, 8  ;;  %p3102_p3 = scmp.lt.s32.totalorder %s3096_s13, %s3981_s9 }
 0x3ba   : > { %p3098_p0 = scmp.ne.s32.totalorder %s3096_s13, %s3097_s21  ;;  %p3103_p4 = scmp.lt.s32.totalorder %s3101_s27, %s3097_s21 }
 0x3bc   : > { %2372 = vrot.lane.b32.xlu0 %v2358_v33, %s3168_s3  ;;  %s2508_s3 = sshll.u32 %s388_s2, 4  ;;  %p3099_p1 = pnand %p3098_p0, %p3259_p5  ;;  %s2509_s3 = int_to_ptr.vmem [resolvable:$true] %s2508_s3 }
 0x3bd   : > { %2485 = vmatpush.bf16.msrb.mxu1 %v2803_v16  ;;  %p3104_p7 = por %p3103_p4, %p3102_p3 }
 0x3be   : > { %2396 = vrot.lane.b32.xlu2 %v2370_v35, %s3162_s22  ;;  %p3100_p2 = pneg %p3099_p1 }
 0x3c0   : > { %2388 = vrot.lane.b32.xlu1 %v2366_v9, %s3166_s29  ;;  %p3105_p8 = pnand %p3104_p7, %p3100_p2 }
 0x3c1   : > { %2486 = vmatpush.bf16.msrb.mxu1 %v2802_v52 }
 0x3c4   : > { %2392 = vrot.lane.b32.xlu0 %v2368_v24, %s3165_s28 }
 0x3c5   : > { %2487 = vmatpush.bf16.msrb.mxu1 %v2801_v17 }
 0x3c9   : > { %2488 = vmatpush.bf16.msrb.mxu1 %v2800_v2 }
 0x410   : > { %v2381_v23 = vpop.permute.xlu2 %2380 }
 0x418   : > { %v2397_v48 = vpop.permute.xlu2 %2396 }
 0x426   : > { %v2385_v20 = vpop.permute.xlu0 %2384 }
 0x42a   : > { %v2377_v22 = vpop.permute.xlu1 %2376 }
 0x42e   : > { %v2373_v21 = vpop.permute.xlu0 %2372 }
 0x42f   : > { %v2399_v30 = vsel %vm1669_vm1, %v2356_v42, %v2373_v21 }
 0x430   : > { %v2401_v31 = vsel %vm2400_vm4, %v2399_v30, %v2377_v22 }
 0x431   : > { %v2403_v32 = vsel %vm2402_vm5, %v2401_v31, %v2381_v23 }
 0x432   : > { %v2405_v34 = vsel %vm2404_vm6, %v2403_v32, %v2385_v20  ;;  %v2389_v37 = vpop.permute.xlu1 %2388 }
 0x433   : > { %v2407_v8 = vsel %vm2406_vm7, %v2405_v34, %v2389_v37 }
 0x436   : > { %v2393_v40 = vpop.permute.xlu0 %2392 }
 0x437   : > { %v2409_v50 = vsel %vm2408_vm8, %v2407_v8, %v2393_v40 }
 0x438   : > { %v2411_v51 = vsel %vm2410_vm9, %v2409_v50, %v2397_v48 }
 0x439   : > { %v2412_v26 = vpack.c.bf16 %v2411_v51, %v2411_v51 }
 0x43b   : > { %2489 = vmatmul.bf16.vlgmr.msrb.gmra.mxu1 %v2412_v26 }
 0x4b8   : > { %v2490_v53 = vpop.f32.mrf.mxu1 }
 0x4b9   : > { %v2491_v36 = vadd.f32 %v2958_v43, %v2490_v53 }
 0x4bb   : > { %2494 = vst [vmem:[%s388_s2] sm:$0xff] %v2491_v36 }
 0x4bc   : > { %3108 = shalt.err (!%p3105_p8)
}
 0x4bd   : > { %2820 = dma.vmem_to_hbm [thread:$0]  (%p3259_p5), %s2509_s3, 128, %s2511_s11, %s2496_s18  }
 0x4c0   : > { %v2492_v55 = vpop.f32.mrf.mxu1 }
 0x4c1 PF: > { %p2842_p9 = scmp.ge.s32.totalorder %s3151_s12, 2  ;;  %s2522_s14 = sand.u32 1, %s3139_s30  }
 0x4c2   : > { %s2523_s22 = scalar_lea.sflag [#allocation4], %s2522_s14 }
 0x4c3   : > { %p2833_p10 = pnand %p2842_p9, %p3263_p6 }
 0x4c5   : > { %p2834_p11 = pneg %p2833_p10 }
 0x4c7   : > { %3134 = dma.done.wait (%p2834_p11), %s2523_s22, 128  }
 0x4c8   : > { %3136 = vsyncadd (%p2834_p11), %s2523_s22, 4294967168  ;;  %s3993_s23 = sld [smem:[#allocation12_spill]]  ;;  %p21_p12 = scmp.ge.s32.totalorder %s3246_s15, 4  }
 0x4c9   : > { %s3994_s11 = sld [smem:[#allocation13_spill]]  ;;  %s3995_s30 = smov %s3143_s10 }
 0x4ca   : > { %s3997_s12 = smov %s3246_s15  ;;  %23 = sbr.rel (!%p21_p12) target bundleno = 8 (0x8), region = 107 }
 0x4ce   : > { %s3996_s10 = smov %s3993_s23 }
 0x4cf   :  { %2529 = vsyncpa [#allocation3], 1 }
 0x4d0   :  { %2531 = vsyncpa [#allocation3 + $0x1], 1 }
 0x4d1   :  { %2532 = vsyncpa [#allocation6], 1 }
 0x4d2   :  { %2533 = vsyncpa [#allocation4], 1 }
 0x4d3   :  { %2535 = vsyncpa [#allocation4 + $0x1], 1 }

</bundles_post_ra>
